<compile_context>
chip_gen: v5e
topology: v5e:2x2
jax: 0.10.0
libtpu: 0.0.40
codegen_flags: <defaults>
</compile_context>

<pallas_src>
import math

import jax
import jax.numpy as jnp
from jax.experimental import pallas as pl
from jax.experimental.pallas import tpu as pltpu

EPS = 1e-5  # nn.LayerNorm default eps


# ----------------------------- shared math helpers ---------------------------
def _layernorm(x, gamma, beta):
    mu = jnp.mean(x, axis=-1, keepdims=True)
    var = jnp.mean((x - mu) ** 2, axis=-1, keepdims=True)
    return (x - mu) * jax.lax.rsqrt(var + EPS) * gamma + beta


def _softmax(s):
    # Exact divide (correctness feedback: the approx reciprocal loosened parity).
    m = jnp.max(s, axis=-1, keepdims=True)
    e = jnp.exp(s - m)
    return e / jnp.sum(e, axis=-1, keepdims=True)


def _gelu_exact(x):
    # nn.GELU() default (approximate='none'): 0.5*x*(1+erf(x/sqrt(2))).
    # TODO(synk): on v5e the tanh-approx GELU (runs on the EUP) is cheaper if
    # exact erf parity is not required.
    return 0.5 * x * (1.0 + jax.lax.erf(x / math.sqrt(2.0)))


# ----------------------------- Pallas kernel ---------------------------------
def make_kernel(S, E, H, block_seqs, compute_dtype):
    d = E // H
    bs = block_seqs
    TB = bs * S  # token rows per grid step (whole sequences)

    def kernel(x_ref,
               n1g_ref, n1b_ref,
               wq_ref, bq_ref, wk_ref, bk_ref, wv_ref, bv_ref,
               wo_ref, bo_ref,
               n2g_ref, n2b_ref,
               lkw_ref, lkb_ref, lvw_ref, lvb_ref,
               f1w_ref, f1b_ref, f2w_ref, f2b_ref,
               out_ref):
        x = x_ref[...]                                     # (TB, E) f32 tokens

        # ---- sub-block 1: pre-norm multi-head self-attention ----
        xn1 = _layernorm(x, n1g_ref[...], n1b_ref[...])    # f32 statistics
        xn1c = xn1.astype(compute_dtype)
        # Three separate Q/K/V projections (no 3E-wide qkv lane slicing);
        # the 1/sqrt(d) attention scale is pre-folded into wq / bq.
        q = jnp.dot(xn1c, wq_ref[...], preferred_element_type=jnp.float32) + bq_ref[...]
        k = jnp.dot(xn1c, wk_ref[...], preferred_element_type=jnp.float32) + bk_ref[...]
        v = jnp.dot(xn1c, wv_ref[...], preferred_element_type=jnp.float32) + bv_ref[...]

        def to_heads(t):  # (TB, E) -> (bs*H, S, d): heads collapsed into batch dim
            return (t.reshape(bs, S, H, d).transpose(0, 2, 1, 3)
                    .reshape(bs * H, S, d).astype(compute_dtype))

        qh, kh, vh = to_heads(q), to_heads(k), to_heads(v)
        # TODO(synk): at real sequence lengths tile K/V with an online-softmax
        # (flash) accumulator instead of the full (bs*H, S, S) score tensor.
        s = jnp.einsum("bqd,bkd->bqk", qh, kh,
                       preferred_element_type=jnp.float32)
        p = _softmax(s)                                     # f32 softmax, exact divide
        ctx = jnp.einsum("bqk,bkd->bqd", p.astype(compute_dtype), vh,
                         preferred_element_type=jnp.float32)
        ctx = ctx.reshape(bs, H, S, d).transpose(0, 2, 1, 3).reshape(TB, E)
        # Single output projection on the concatenated heads (one K=E MXU pass).
        attn = jnp.dot(ctx.astype(compute_dtype), wo_ref[...],
                       preferred_element_type=jnp.float32) + bo_ref[...]
        x1 = x + attn                                       # residual 1 (dropout = id)

        # ---- sub-block 2: landscape attention (wrapper-fused) + FFN ----
        xn2 = _layernorm(x1, n2g_ref[...], n2b_ref[...])
        xn2c = xn2.astype(compute_dtype)
        # lkw = qpw.T @ pkeys.T / sqrt(Pk) ; lvw = pvals @ lpw.T  (fused in wrapper)
        sc = jnp.dot(xn2c, lkw_ref[...], preferred_element_type=jnp.float32) + lkb_ref[...]
        w = _softmax(sc)
        linfo = jnp.dot(w.astype(compute_dtype), lvw_ref[...],
                        preferred_element_type=jnp.float32) + lvb_ref[...]

        ffn_in = (xn2 + linfo).astype(compute_dtype)        # dropout = identity
        # TODO(synk): at real ff_dim, tile F on an extra 'arbitrary' grid axis
        # with an f32 VMEM accumulator instead of holding the full (TB, F) h1.
        h1 = jnp.dot(ffn_in, f1w_ref[...], preferred_element_type=jnp.float32) + f1b_ref[...]
        g = _gelu_exact(h1)
        y = jnp.dot(g.astype(compute_dtype), f2w_ref[...],
                    preferred_element_type=jnp.float32) + f2b_ref[...]

        out_ref[...] = x1 + y                               # residual 2, lane-dense store

    return kernel


# ----------------------------- one-time weight preparation --------------------
def prepare_params(params, *, num_heads, compute_dtype=jnp.bfloat16):
    """Transpose / split / fuse / cast the PyTorch-layout weights ONCE.

    Done outside the per-call wrapper so no per-invocation transposes or fusion
    matmuls hit HBM. Matmul weight matrices are cast to `compute_dtype` (bf16 by
    default for the MXU); biases and LayerNorm params stay f32.
    """
    E = params["opw"].shape[0]
    d = E // num_heads
    attn_scale = 1.0 / math.sqrt(d)
    Pk = params["pkeys"].shape[1]
    land_scale = 1.0 / math.sqrt(Pk)

    ipw, ipb = params["ipw"], params["ipb"]                 # (3E, E), (1, 3E)
    f32, cd = jnp.float32, compute_dtype

    return {
        # LayerNorms (f32 statistics)
        "n1g": params["n1g"].astype(f32), "n1b": params["n1b"].astype(f32),
        "n2g": params["n2g"].astype(f32), "n2b": params["n2b"].astype(f32),
        # in_proj split into Q/K/V; attention scale folded into Q weight & bias.
        "wq": (ipw[:E].T * attn_scale).astype(cd),
        "bq": (ipb[:, :E] * attn_scale).astype(f32),
        "wk": ipw[E:2 * E].T.astype(cd),
        "bk": ipb[:, E:2 * E].astype(f32),
        "wv": ipw[2 * E:].T.astype(cd),
        "bv": ipb[:, 2 * E:].astype(f32),
        "wo": params["opw"].T.astype(cd),
        "bo": params["opb"].astype(f32),
        # Landscape chain fused: softmax(xn2 @ lkw + lkb) @ lvw + lvb
        "lkw": ((params["qpw"].T @ params["pkeys"].T) * land_scale).astype(cd),
        "lkb": ((params["qpb"] @ params["pkeys"].T) * land_scale).astype(f32),
        "lvw": (params["pvals"] @ params["lpw"].T).astype(cd),
        "lvb": params["lpb"].astype(f32),
        # FFN
        "f1w": params["f1w"].T.astype(cd), "f1b": params["f1b"].astype(f32),
        "f2w": params["f2w"].T.astype(cd), "f2b": params["f2b"].astype(f32),
    }


_WEIGHT_ORDER = ("n1g", "n1b", "wq", "bq", "wk", "bk", "wv", "bv", "wo", "bo",
                 "n2g", "n2b", "lkw", "lkb", "lvw", "lvb", "f1w", "f1b", "f2w", "f2b")


# ----------------------------- wrapper ----------------------------------------
def landscape_transformer_block(x, prepared, *, num_heads, block_seqs=None):
    """x: [B, S, E] float32. prepared: output of prepare_params()."""
    B, S, E = x.shape
    if block_seqs is None:
        # Target ~256 token rows per block, but only whole sequences so that
        # self-attention stays local to a block; cap at the batch size.
        block_seqs = max(1, min(B, pl.cdiv(256, S)))
    assert B % block_seqs == 0, "batch must be divisible by block_seqs"
    TB = block_seqs * S
    grid = (B // block_seqs,)

    weights = [prepared[k] for k in _WEIGHT_ORDER]
    compute_dtype = prepared["wq"].dtype
    kernel = make_kernel(S, E, num_heads, block_seqs, compute_dtype)

    # Token slab: pipelined HBM<->VMEM (TB, E) block per grid step.
    tok_spec = pl.BlockSpec((TB, E), lambda i: (i, 0))
    # Weights: constant index_map -> fetched once, resident in VMEM across steps.
    w_specs = [pl.BlockSpec(w.shape, lambda i: (0, 0)) for w in weights]

    x_tok = x.reshape(B * S, E).astype(jnp.float32)  # lane-dense token layout
    out = pl.pallas_call(
        kernel,
        grid=grid,
        out_shape=jax.ShapeDtypeStruct((B * S, E), jnp.float32),
        in_specs=[tok_spec] + w_specs,
        out_specs=tok_spec,
        compiler_params=pltpu.CompilerParams(
            # Independent token blocks -> v7x can shard steps across its 2 TCs
            # and the HBM<->VMEM pipeline overlaps with compute.
            dimension_semantics=("parallel",),
            # Explicit scoped-VMEM budget: > v5e's 16 MiB default, with headroom
            # under v7x's 64 MiB physical VMEM.
            vmem_limit_bytes=48 * 1024 * 1024,
        ),
    )(x_tok, *weights)
    return out.reshape(B, S, E)


# ----------------------------- pure-JAX reference ------------------------------
def reference_forward(x, p, *, num_heads):
    B, S, E = x.shape
    d = E // num_heads

    xn1 = _layernorm(x, p["n1g"], p["n1b"])
    qkv = xn1 @ p["ipw"].T + p["ipb"]
    q, k, v = qkv[..., :E], qkv[..., E:2 * E], qkv[..., 2 * E:]

    def split(t):  # [B,S,E] -> [B,H,S,d]
        return t.reshape(B, S, num_heads, d).transpose(0, 2, 1, 3)

    qh, kh, vh = split(q), split(k), split(v)
    s = jnp.einsum("bhqd,bhkd->bhqk", qh, kh) / math.sqrt(d)
    pw = _softmax(s)
    ao = jnp.einsum("bhqk,bhkd->bhqd", pw, vh).transpose(0, 2, 1, 3).reshape(B, S, E)
    attn_out = ao @ p["opw"].T + p["opb"]
    x1 = x + attn_out

    xn2 = _layernorm(x1, p["n2g"], p["n2b"])
    qp = xn2 @ p["qpw"].T + p["qpb"]
    ls = qp @ p["pkeys"].T / math.sqrt(p["pkeys"].shape[1])
    lw = _softmax(ls)
    ctx = lw @ p["pvals"]
    linfo = ctx @ p["lpw"].T + p["lpb"]
    ffn_in = xn2 + linfo
    h1 = ffn_in @ p["f1w"].T + p["f1b"]
    g = _gelu_exact(h1)
    ffn_out = g @ p["f2w"].T + p["f2b"]
    return x1 + ffn_out


# ----------------------------- main ---------------------------------------------
if __name__ == "__main__":
    # True-f32 matmuls for the reference / f32-parity path (TPU default matmul
    # precision is lower); the bf16 kernel path is unaffected by this setting.
    jax.config.update("jax_default_matmul_precision", "highest")

    B, S, E, H, F = 2, 8, 32, 4, 64          # embed_dim=32, num_heads=4, ff_dim=64
    Np, Pk, Pv = 16, 16, 16                  # prototypes / key dim / value dim

    key = jax.random.PRNGKey(0)
    ks = jax.random.split(key, 16)

    def xavier(k, shape):
        fan_out, fan_in = shape
        lim = math.sqrt(6.0 / (fan_in + fan_out))
        return jax.random.uniform(k, shape, jnp.float32, -lim, lim)

    params = {
        # LayerNorms
        "n1g": 1.0 + 0.1 * jax.random.normal(ks[0], (1, E), jnp.float32),
        "n1b": 0.1 * jax.random.normal(ks[1], (1, E), jnp.float32),
        "n2g": 1.0 + 0.1 * jax.random.normal(ks[2], (1, E), jnp.float32),
        "n2b": 0.1 * jax.random.normal(ks[3], (1, E), jnp.float32),
        # MultiheadAttention (in_proj: [3E,E], out_proj: [E,E])
        "ipw": xavier(ks[4], (3 * E, E)),
        "ipb": jnp.zeros((1, 3 * E), jnp.float32),
        "opw": xavier(ks[5], (E, E)),
        "opb": jnp.zeros((1, E), jnp.float32),
        # LandscapeAttention
        "qpw": xavier(ks[6], (Pk, E)),
        "qpb": jnp.zeros((1, Pk), jnp.float32),
        "pkeys": xavier(ks[7], (Np, Pk)),
        "pvals": xavier(ks[8], (Np, Pv)),
        # landscape_proj
        "lpw": xavier(ks[9], (E, Pv)),
        "lpb": jnp.zeros((1, E), jnp.float32),
        # FFN
        "f1w": xavier(ks[10], (F, E)),
        "f1b": 0.01 * jax.random.normal(ks[11], (1, F), jnp.float32),
        "f2w": xavier(ks[12], (E, F)),
        "f2b": 0.01 * jax.random.normal(ks[13], (1, E), jnp.float32),
    }

    x = jax.random.normal(ks[14], (B, S, E), jnp.float32)
    ref = reference_forward(x, params, num_heads=H)

    # --- strict parity check: f32 MXU operands, exact softmax divide ---
    # block_seqs=1 -> grid=(2,) so the gridded/pipelined path is exercised.
    prep_f32 = prepare_params(params, num_heads=H, compute_dtype=jnp.float32)
    out_f32 = landscape_transformer_block(x, prep_f32, num_heads=H, block_seqs=1)
    out_f32 = jax.block_until_ready(out_f32)
    assert out_f32.shape == (B, S, E)
    err32 = float(jnp.max(jnp.abs(out_f32 - ref)))
    assert jnp.allclose(out_f32, ref, atol=5e-4, rtol=5e-4), f"f32 max abs err = {err32}"

    # --- default perf path: bf16 MXU operands (f32 accumulation & statistics) ---
    prep_bf16 = prepare_params(params, num_heads=H)   # compute_dtype = bfloat16
    out_bf16 = landscape_transformer_block(x, prep_bf16, num_heads=H, block_seqs=1)
    out_bf16 = jax.block_until_ready(out_bf16)
    err16 = float(jnp.max(jnp.abs(out_bf16 - ref)))
    # bf16 operand rounding (~2^-9 relative) gives O(1e-2) deviation from the
    # pure-f32 reference; this is the expected cost of MXU-native operands.
    assert jnp.allclose(out_bf16, ref, atol=2.5e-1, rtol=2.5e-2), f"bf16 max abs err = {err16}"

    # TODO(synk): dropout is identity (inference mode); training-mode stochastic
    # dropout and key_padding_mask handling are not implemented.
    print("KERNEL_OK")
</pallas_src>

<mosaic_0001>
module attributes {stable_mosaic.version = 11 : i64} {
  func.func @kernel(%arg0: i32, %arg1: memref<8x32xf32, #tpu.memory_space<vmem>>, %arg2: memref<1x32xf32, #tpu.memory_space<vmem>>, %arg3: memref<1x32xf32, #tpu.memory_space<vmem>>, %arg4: memref<32x32xf32, #tpu.memory_space<vmem>>, %arg5: memref<1x32xf32, #tpu.memory_space<vmem>>, %arg6: memref<32x32xf32, #tpu.memory_space<vmem>>, %arg7: memref<1x32xf32, #tpu.memory_space<vmem>>, %arg8: memref<32x32xf32, #tpu.memory_space<vmem>>, %arg9: memref<1x32xf32, #tpu.memory_space<vmem>>, %arg10: memref<32x32xf32, #tpu.memory_space<vmem>>, %arg11: memref<1x32xf32, #tpu.memory_space<vmem>>, %arg12: memref<1x32xf32, #tpu.memory_space<vmem>>, %arg13: memref<1x32xf32, #tpu.memory_space<vmem>>, %arg14: memref<32x16xf32, #tpu.memory_space<vmem>>, %arg15: memref<1x16xf32, #tpu.memory_space<vmem>>, %arg16: memref<16x32xf32, #tpu.memory_space<vmem>>, %arg17: memref<1x32xf32, #tpu.memory_space<vmem>>, %arg18: memref<32x64xf32, #tpu.memory_space<vmem>>, %arg19: memref<1x64xf32, #tpu.memory_space<vmem>>, %arg20: memref<64x32xf32, #tpu.memory_space<vmem>>, %arg21: memref<1x32xf32, #tpu.memory_space<vmem>>, %arg22: memref<8x32xf32, #tpu.memory_space<vmem>>) attributes {dimension_semantics = [#tpu.dimension_semantics<parallel>], iteration_bounds = array<i64: 2>, scalar_prefetch = 0 : i64, scratch_operands = 0 : i64, tpu.core_type = #tpu.core_type<tc>, window_params = [{transform_indices = @transform_0, window_bounds = array<i64: 8, 32>}, {pipeline_mode = #tpu.pipeline_mode<synchronous>, transform_indices = @transform_1, window_bounds = array<i64: 1, 32>}, {pipeline_mode = #tpu.pipeline_mode<synchronous>, transform_indices = @transform_2, window_bounds = array<i64: 1, 32>}, {pipeline_mode = #tpu.pipeline_mode<synchronous>, transform_indices = @transform_3, window_bounds = array<i64: 32, 32>}, {pipeline_mode = #tpu.pipeline_mode<synchronous>, transform_indices = @transform_4, window_bounds = array<i64: 1, 32>}, {pipeline_mode = #tpu.pipeline_mode<synchronous>, transform_indices = @transform_5, window_bounds = array<i64: 32, 32>}, {pipeline_mode = #tpu.pipeline_mode<synchronous>, transform_indices = @transform_6, window_bounds = array<i64: 1, 32>}, {pipeline_mode = #tpu.pipeline_mode<synchronous>, transform_indices = @transform_7, window_bounds = array<i64: 32, 32>}, {pipeline_mode = #tpu.pipeline_mode<synchronous>, transform_indices = @transform_8, window_bounds = array<i64: 1, 32>}, {pipeline_mode = #tpu.pipeline_mode<synchronous>, transform_indices = @transform_9, window_bounds = array<i64: 32, 32>}, {pipeline_mode = #tpu.pipeline_mode<synchronous>, transform_indices = @transform_10, window_bounds = array<i64: 1, 32>}, {pipeline_mode = #tpu.pipeline_mode<synchronous>, transform_indices = @transform_11, window_bounds = array<i64: 1, 32>}, {pipeline_mode = #tpu.pipeline_mode<synchronous>, transform_indices = @transform_12, window_bounds = array<i64: 1, 32>}, {pipeline_mode = #tpu.pipeline_mode<synchronous>, transform_indices = @transform_13, window_bounds = array<i64: 32, 16>}, {pipeline_mode = #tpu.pipeline_mode<synchronous>, transform_indices = @transform_14, window_bounds = array<i64: 1, 16>}, {pipeline_mode = #tpu.pipeline_mode<synchronous>, transform_indices = @transform_15, window_bounds = array<i64: 16, 32>}, {pipeline_mode = #tpu.pipeline_mode<synchronous>, transform_indices = @transform_16, window_bounds = array<i64: 1, 32>}, {pipeline_mode = #tpu.pipeline_mode<synchronous>, transform_indices = @transform_17, window_bounds = array<i64: 32, 64>}, {pipeline_mode = #tpu.pipeline_mode<synchronous>, transform_indices = @transform_18, window_bounds = array<i64: 1, 64>}, {pipeline_mode = #tpu.pipeline_mode<synchronous>, transform_indices = @transform_19, window_bounds = array<i64: 64, 32>}, {pipeline_mode = #tpu.pipeline_mode<synchronous>, transform_indices = @transform_20, window_bounds = array<i64: 1, 32>}, {transform_indices = @transform_21, window_bounds = array<i64: 8, 32>}]} {
    %c0 = arith.constant 0 : index
    %c0_0 = arith.constant 0 : index
    %0 = vector.load %arg1[%c0, %c0_0] : memref<8x32xf32, #tpu.memory_space<vmem>>, vector<8x32xf32>
    %c0_1 = arith.constant 0 : index
    %c0_2 = arith.constant 0 : index
    %1 = vector.load %arg2[%c0_1, %c0_2] : memref<1x32xf32, #tpu.memory_space<vmem>>, vector<1x32xf32>
    %c0_3 = arith.constant 0 : index
    %c0_4 = arith.constant 0 : index
    %2 = vector.load %arg3[%c0_3, %c0_4] : memref<1x32xf32, #tpu.memory_space<vmem>>, vector<1x32xf32>
    %cst = arith.constant dense<0.000000e+00> : vector<8xf32>
    %3 = vector.multi_reduction <add>, %0, %cst [1] : vector<8x32xf32> to vector<8xf32>
    %4 = vector.shape_cast %3 : vector<8xf32> to vector<8x1xf32>
    %cst_5 = arith.constant 3.200000e+01 : f32
    %5 = vector.broadcast %cst_5 : f32 to vector<8x1xf32>
    %6 = arith.divf %4, %5 : vector<8x1xf32>
    %7 = vector.broadcast %6 : vector<8x1xf32> to vector<8x32xf32>
    %8 = arith.subf %0, %7 : vector<8x32xf32>
    %9 = arith.mulf %8, %8 : vector<8x32xf32>
    %cst_6 = arith.constant dense<0.000000e+00> : vector<8xf32>
    %10 = vector.multi_reduction <add>, %9, %cst_6 [1] : vector<8x32xf32> to vector<8xf32>
    %11 = vector.shape_cast %10 : vector<8xf32> to vector<8x1xf32>
    %cst_7 = arith.constant 3.200000e+01 : f32
    %12 = vector.broadcast %cst_7 : f32 to vector<8x1xf32>
    %13 = arith.divf %11, %12 : vector<8x1xf32>
    %14 = vector.broadcast %6 : vector<8x1xf32> to vector<8x32xf32>
    %15 = arith.subf %0, %14 : vector<8x32xf32>
    %cst_8 = arith.constant 9.99999974E-6 : f32
    %16 = vector.broadcast %cst_8 : f32 to vector<8x1xf32>
    %17 = arith.addf %13, %16 : vector<8x1xf32>
    %18 = math.rsqrt %17 : vector<8x1xf32>
    %19 = vector.broadcast %18 : vector<8x1xf32> to vector<8x32xf32>
    %20 = arith.mulf %15, %19 : vector<8x32xf32>
    %21 = vector.broadcast %1 : vector<1x32xf32> to vector<8x32xf32>
    %22 = arith.mulf %20, %21 : vector<8x32xf32>
    %23 = vector.broadcast %2 : vector<1x32xf32> to vector<8x32xf32>
    %24 = arith.addf %22, %23 : vector<8x32xf32>
    %c0_9 = arith.constant 0 : index
    %c0_10 = arith.constant 0 : index
    %25 = vector.load %arg4[%c0_9, %c0_10] : memref<32x32xf32, #tpu.memory_space<vmem>>, vector<32x32xf32>
    %cst_11 = arith.constant dense<0.000000e+00> : vector<8x32xf32>
    %26 = tpu.matmul %24, %25, %cst_11 {dimension_numbers = #tpu.dot_dimension_numbers<[1], [0], [0], [1], [0, 0, 1, 1], [], []>, precision = #tpu.contract_precision<fp32>} : vector<8x32xf32>, vector<32x32xf32>, vector<8x32xf32> -> vector<8x32xf32>
    %c0_12 = arith.constant 0 : index
    %c0_13 = arith.constant 0 : index
    %27 = vector.load %arg5[%c0_12, %c0_13] : memref<1x32xf32, #tpu.memory_space<vmem>>, vector<1x32xf32>
    %28 = vector.broadcast %27 : vector<1x32xf32> to vector<8x32xf32>
    %29 = arith.addf %26, %28 : vector<8x32xf32>
    %c0_14 = arith.constant 0 : index
    %c0_15 = arith.constant 0 : index
    %30 = vector.load %arg6[%c0_14, %c0_15] : memref<32x32xf32, #tpu.memory_space<vmem>>, vector<32x32xf32>
    %cst_16 = arith.constant dense<0.000000e+00> : vector<8x32xf32>
    %31 = tpu.matmul %24, %30, %cst_16 {dimension_numbers = #tpu.dot_dimension_numbers<[1], [0], [0], [1], [0, 0, 1, 1], [], []>, precision = #tpu.contract_precision<fp32>} : vector<8x32xf32>, vector<32x32xf32>, vector<8x32xf32> -> vector<8x32xf32>
    %c0_17 = arith.constant 0 : index
    %c0_18 = arith.constant 0 : index
    %32 = vector.load %arg7[%c0_17, %c0_18] : memref<1x32xf32, #tpu.memory_space<vmem>>, vector<1x32xf32>
    %33 = vector.broadcast %32 : vector<1x32xf32> to vector<8x32xf32>
    %34 = arith.addf %31, %33 : vector<8x32xf32>
    %c0_19 = arith.constant 0 : index
    %c0_20 = arith.constant 0 : index
    %35 = vector.load %arg8[%c0_19, %c0_20] : memref<32x32xf32, #tpu.memory_space<vmem>>, vector<32x32xf32>
    %cst_21 = arith.constant dense<0.000000e+00> : vector<8x32xf32>
    %36 = tpu.matmul %24, %35, %cst_21 {dimension_numbers = #tpu.dot_dimension_numbers<[1], [0], [0], [1], [0, 0, 1, 1], [], []>, precision = #tpu.contract_precision<fp32>} : vector<8x32xf32>, vector<32x32xf32>, vector<8x32xf32> -> vector<8x32xf32>
    %c0_22 = arith.constant 0 : index
    %c0_23 = arith.constant 0 : index
    %37 = vector.load %arg9[%c0_22, %c0_23] : memref<1x32xf32, #tpu.memory_space<vmem>>, vector<1x32xf32>
    %38 = vector.broadcast %37 : vector<1x32xf32> to vector<8x32xf32>
    %39 = arith.addf %36, %38 : vector<8x32xf32>
    %40 = vector.shape_cast %29 : vector<8x32xf32> to vector<1x8x4x8xf32>
    %41 = tpu.transpose %40, [0, 2, 1, 3] : vector<1x8x4x8xf32> -> vector<1x4x8x8xf32>
    %42 = vector.shape_cast %41 : vector<1x4x8x8xf32> to vector<4x8x8xf32>
    %43 = vector.shape_cast %34 : vector<8x32xf32> to vector<1x8x4x8xf32>
    %44 = tpu.transpose %43, [0, 2, 1, 3] : vector<1x8x4x8xf32> -> vector<1x4x8x8xf32>
    %45 = vector.shape_cast %44 : vector<1x4x8x8xf32> to vector<4x8x8xf32>
    %46 = vector.shape_cast %39 : vector<8x32xf32> to vector<1x8x4x8xf32>
    %47 = tpu.transpose %46, [0, 2, 1, 3] : vector<1x8x4x8xf32> -> vector<1x4x8x8xf32>
    %48 = vector.shape_cast %47 : vector<1x4x8x8xf32> to vector<4x8x8xf32>
    "tpu.trace_start"() <{level = 10 : i32, message = "bqd,bkd->bqk"}> : () -> ()
    %cst_24 = arith.constant dense<0.000000e+00> : vector<4x8x8xf32>
    %49 = tpu.matmul %42, %45, %cst_24 {dimension_numbers = #tpu.dot_dimension_numbers<[2], [2], [1], [1], [0, 0, 0, 1, 1, 1], [0], [0]>, precision = #tpu.contract_precision<fp32>} : vector<4x8x8xf32>, vector<4x8x8xf32>, vector<4x8x8xf32> -> vector<4x8x8xf32>
    "tpu.trace_stop"() : () -> ()
    %cst_25 = arith.constant dense<0xFF800000> : vector<4x8xf32>
    %50 = vector.multi_reduction <maximumf>, %49, %cst_25 [2] : vector<4x8x8xf32> to vector<4x8xf32>
    %51 = vector.shape_cast %50 : vector<4x8xf32> to vector<4x8x1xf32>
    %52 = vector.broadcast %51 : vector<4x8x1xf32> to vector<4x8x8xf32>
    %53 = arith.subf %49, %52 : vector<4x8x8xf32>
    %54 = math.exp %53 : vector<4x8x8xf32>
    %cst_26 = arith.constant dense<0.000000e+00> : vector<4x8xf32>
    %55 = vector.multi_reduction <add>, %54, %cst_26 [2] : vector<4x8x8xf32> to vector<4x8xf32>
    %56 = vector.shape_cast %55 : vector<4x8xf32> to vector<4x8x1xf32>
    %57 = vector.broadcast %56 : vector<4x8x1xf32> to vector<4x8x8xf32>
    %58 = arith.divf %54, %57 : vector<4x8x8xf32>
    "tpu.trace_start"() <{level = 10 : i32, message = "bqk,bkd->bqd"}> : () -> ()
    %cst_27 = arith.constant dense<0.000000e+00> : vector<4x8x8xf32>
    %59 = tpu.matmul %58, %48, %cst_27 {dimension_numbers = #tpu.dot_dimension_numbers<[2], [1], [1], [2], [0, 0, 0, 1, 1, 2], [0], [0]>, precision = #tpu.contract_precision<fp32>} : vector<4x8x8xf32>, vector<4x8x8xf32>, vector<4x8x8xf32> -> vector<4x8x8xf32>
    "tpu.trace_stop"() : () -> ()
    %60 = vector.shape_cast %59 : vector<4x8x8xf32> to vector<1x4x8x8xf32>
    %61 = tpu.transpose %60, [0, 2, 1, 3] : vector<1x4x8x8xf32> -> vector<1x8x4x8xf32>
    %62 = vector.shape_cast %61 : vector<1x8x4x8xf32> to vector<8x32xf32>
    %c0_28 = arith.constant 0 : index
    %c0_29 = arith.constant 0 : index
    %63 = vector.load %arg10[%c0_28, %c0_29] : memref<32x32xf32, #tpu.memory_space<vmem>>, vector<32x32xf32>
    %cst_30 = arith.constant dense<0.000000e+00> : vector<8x32xf32>
    %64 = tpu.matmul %62, %63, %cst_30 {dimension_numbers = #tpu.dot_dimension_numbers<[1], [0], [0], [1], [0, 0, 1, 1], [], []>, precision = #tpu.contract_precision<fp32>} : vector<8x32xf32>, vector<32x32xf32>, vector<8x32xf32> -> vector<8x32xf32>
    %c0_31 = arith.constant 0 : index
    %c0_32 = arith.constant 0 : index
    %65 = vector.load %arg11[%c0_31, %c0_32] : memref<1x32xf32, #tpu.memory_space<vmem>>, vector<1x32xf32>
    %66 = vector.broadcast %65 : vector<1x32xf32> to vector<8x32xf32>
    %67 = arith.addf %64, %66 : vector<8x32xf32>
    %68 = arith.addf %0, %67 : vector<8x32xf32>
    %c0_33 = arith.constant 0 : index
    %c0_34 = arith.constant 0 : index
    %69 = vector.load %arg12[%c0_33, %c0_34] : memref<1x32xf32, #tpu.memory_space<vmem>>, vector<1x32xf32>
    %c0_35 = arith.constant 0 : index
    %c0_36 = arith.constant 0 : index
    %70 = vector.load %arg13[%c0_35, %c0_36] : memref<1x32xf32, #tpu.memory_space<vmem>>, vector<1x32xf32>
    %cst_37 = arith.constant dense<0.000000e+00> : vector<8xf32>
    %71 = vector.multi_reduction <add>, %68, %cst_37 [1] : vector<8x32xf32> to vector<8xf32>
    %72 = vector.shape_cast %71 : vector<8xf32> to vector<8x1xf32>
    %cst_38 = arith.constant 3.200000e+01 : f32
    %73 = vector.broadcast %cst_38 : f32 to vector<8x1xf32>
    %74 = arith.divf %72, %73 : vector<8x1xf32>
    %75 = vector.broadcast %74 : vector<8x1xf32> to vector<8x32xf32>
    %76 = arith.subf %68, %75 : vector<8x32xf32>
    %77 = arith.mulf %76, %76 : vector<8x32xf32>
    %cst_39 = arith.constant dense<0.000000e+00> : vector<8xf32>
    %78 = vector.multi_reduction <add>, %77, %cst_39 [1] : vector<8x32xf32> to vector<8xf32>
    %79 = vector.shape_cast %78 : vector<8xf32> to vector<8x1xf32>
    %cst_40 = arith.constant 3.200000e+01 : f32
    %80 = vector.broadcast %cst_40 : f32 to vector<8x1xf32>
    %81 = arith.divf %79, %80 : vector<8x1xf32>
    %82 = vector.broadcast %74 : vector<8x1xf32> to vector<8x32xf32>
    %83 = arith.subf %68, %82 : vector<8x32xf32>
    %cst_41 = arith.constant 9.99999974E-6 : f32
    %84 = vector.broadcast %cst_41 : f32 to vector<8x1xf32>
    %85 = arith.addf %81, %84 : vector<8x1xf32>
    %86 = math.rsqrt %85 : vector<8x1xf32>
    %87 = vector.broadcast %86 : vector<8x1xf32> to vector<8x32xf32>
    %88 = arith.mulf %83, %87 : vector<8x32xf32>
    %89 = vector.broadcast %69 : vector<1x32xf32> to vector<8x32xf32>
    %90 = arith.mulf %88, %89 : vector<8x32xf32>
    %91 = vector.broadcast %70 : vector<1x32xf32> to vector<8x32xf32>
    %92 = arith.addf %90, %91 : vector<8x32xf32>
    %c0_42 = arith.constant 0 : index
    %c0_43 = arith.constant 0 : index
    %93 = vector.load %arg14[%c0_42, %c0_43] : memref<32x16xf32, #tpu.memory_space<vmem>>, vector<32x16xf32>
    %cst_44 = arith.constant dense<0.000000e+00> : vector<8x16xf32>
    %94 = tpu.matmul %92, %93, %cst_44 {dimension_numbers = #tpu.dot_dimension_numbers<[1], [0], [0], [1], [0, 0, 1, 1], [], []>, precision = #tpu.contract_precision<fp32>} : vector<8x32xf32>, vector<32x16xf32>, vector<8x16xf32> -> vector<8x16xf32>
    %c0_45 = arith.constant 0 : index
    %c0_46 = arith.constant 0 : index
    %95 = vector.load %arg15[%c0_45, %c0_46] : memref<1x16xf32, #tpu.memory_space<vmem>>, vector<1x16xf32>
    %96 = vector.broadcast %95 : vector<1x16xf32> to vector<8x16xf32>
    %97 = arith.addf %94, %96 : vector<8x16xf32>
    %cst_47 = arith.constant dense<0xFF800000> : vector<8xf32>
    %98 = vector.multi_reduction <maximumf>, %97, %cst_47 [1] : vector<8x16xf32> to vector<8xf32>
    %99 = vector.shape_cast %98 : vector<8xf32> to vector<8x1xf32>
    %100 = vector.broadcast %99 : vector<8x1xf32> to vector<8x16xf32>
    %101 = arith.subf %97, %100 : vector<8x16xf32>
    %102 = math.exp %101 : vector<8x16xf32>
    %cst_48 = arith.constant dense<0.000000e+00> : vector<8xf32>
    %103 = vector.multi_reduction <add>, %102, %cst_48 [1] : vector<8x16xf32> to vector<8xf32>
    %104 = vector.shape_cast %103 : vector<8xf32> to vector<8x1xf32>
    %105 = vector.broadcast %104 : vector<8x1xf32> to vector<8x16xf32>
    %106 = arith.divf %102, %105 : vector<8x16xf32>
    %c0_49 = arith.constant 0 : index
    %c0_50 = arith.constant 0 : index
    %107 = vector.load %arg16[%c0_49, %c0_50] : memref<16x32xf32, #tpu.memory_space<vmem>>, vector<16x32xf32>
    %cst_51 = arith.constant dense<0.000000e+00> : vector<8x32xf32>
    %108 = tpu.matmul %106, %107, %cst_51 {dimension_numbers = #tpu.dot_dimension_numbers<[1], [0], [0], [1], [0, 0, 1, 1], [], []>, precision = #tpu.contract_precision<fp32>} : vector<8x16xf32>, vector<16x32xf32>, vector<8x32xf32> -> vector<8x32xf32>
    %c0_52 = arith.constant 0 : index
    %c0_53 = arith.constant 0 : index
    %109 = vector.load %arg17[%c0_52, %c0_53] : memref<1x32xf32, #tpu.memory_space<vmem>>, vector<1x32xf32>
    %110 = vector.broadcast %109 : vector<1x32xf32> to vector<8x32xf32>
    %111 = arith.addf %108, %110 : vector<8x32xf32>
    %112 = arith.addf %92, %111 : vector<8x32xf32>
    %c0_54 = arith.constant 0 : index
    %c0_55 = arith.constant 0 : index
    %113 = vector.load %arg18[%c0_54, %c0_55] : memref<32x64xf32, #tpu.memory_space<vmem>>, vector<32x64xf32>
    %cst_56 = arith.constant dense<0.000000e+00> : vector<8x64xf32>
    %114 = tpu.matmul %112, %113, %cst_56 {dimension_numbers = #tpu.dot_dimension_numbers<[1], [0], [0], [1], [0, 0, 1, 1], [], []>, precision = #tpu.contract_precision<fp32>} : vector<8x32xf32>, vector<32x64xf32>, vector<8x64xf32> -> vector<8x64xf32>
    %c0_57 = arith.constant 0 : index
    %c0_58 = arith.constant 0 : index
    %115 = vector.load %arg19[%c0_57, %c0_58] : memref<1x64xf32, #tpu.memory_space<vmem>>, vector<1x64xf32>
    %116 = vector.broadcast %115 : vector<1x64xf32> to vector<8x64xf32>
    %117 = arith.addf %114, %116 : vector<8x64xf32>
    %cst_59 = arith.constant 5.000000e-01 : f32
    %118 = vector.broadcast %cst_59 : f32 to vector<8x64xf32>
    %119 = arith.mulf %118, %117 : vector<8x64xf32>
    %cst_60 = arith.constant 1.41421354 : f32
    %120 = vector.broadcast %cst_60 : f32 to vector<8x64xf32>
    %121 = arith.divf %117, %120 : vector<8x64xf32>
    %122 = math.erf %121 : vector<8x64xf32>
    %cst_61 = arith.constant 1.000000e+00 : f32
    %123 = vector.broadcast %cst_61 : f32 to vector<8x64xf32>
    %124 = arith.addf %123, %122 : vector<8x64xf32>
    %125 = arith.mulf %119, %124 : vector<8x64xf32>
    %c0_62 = arith.constant 0 : index
    %c0_63 = arith.constant 0 : index
    %126 = vector.load %arg20[%c0_62, %c0_63] : memref<64x32xf32, #tpu.memory_space<vmem>>, vector<64x32xf32>
    %cst_64 = arith.constant dense<0.000000e+00> : vector<8x32xf32>
    %127 = tpu.matmul %125, %126, %cst_64 {dimension_numbers = #tpu.dot_dimension_numbers<[1], [0], [0], [1], [0, 0, 1, 1], [], []>, precision = #tpu.contract_precision<fp32>} : vector<8x64xf32>, vector<64x32xf32>, vector<8x32xf32> -> vector<8x32xf32>
    %c0_65 = arith.constant 0 : index
    %c0_66 = arith.constant 0 : index
    %128 = vector.load %arg21[%c0_65, %c0_66] : memref<1x32xf32, #tpu.memory_space<vmem>>, vector<1x32xf32>
    %129 = vector.broadcast %128 : vector<1x32xf32> to vector<8x32xf32>
    %130 = arith.addf %127, %129 : vector<8x32xf32>
    %131 = arith.addf %68, %130 : vector<8x32xf32>
    %c0_67 = arith.constant 0 : index
    %c0_68 = arith.constant 0 : index
    %132 = vector.load %arg22[%c0_67, %c0_68] : memref<8x32xf32, #tpu.memory_space<vmem>>, vector<8x32xf32>
    tpu.vector_store %arg22[%c0_67, %c0_68], %131 {strides = array<i32>} : memref<8x32xf32, #tpu.memory_space<vmem>>, vector<8x32xf32>,
    return
  }
  func.func @transform_0(%arg0: i32) -> (i32, i32) {
    %c0_i32 = arith.constant 0 : i32
    %c0_i32_0 = arith.constant 0 : i32
    return %arg0, %c0_i32 : i32, i32
  }
  func.func @transform_1(%arg0: i32) -> (i32, i32) {
    %c0_i32 = arith.constant 0 : i32
    %c0_i32_0 = arith.constant 0 : i32
    %c0_i32_1 = arith.constant 0 : i32
    return %c0_i32, %c0_i32_0 : i32, i32
  }
  func.func @transform_2(%arg0: i32) -> (i32, i32) {
    %c0_i32 = arith.constant 0 : i32
    %c0_i32_0 = arith.constant 0 : i32
    %c0_i32_1 = arith.constant 0 : i32
    return %c0_i32, %c0_i32_0 : i32, i32
  }
  func.func @transform_3(%arg0: i32) -> (i32, i32) {
    %c0_i32 = arith.constant 0 : i32
    %c0_i32_0 = arith.constant 0 : i32
    %c0_i32_1 = arith.constant 0 : i32
    return %c0_i32, %c0_i32_0 : i32, i32
  }
  func.func @transform_4(%arg0: i32) -> (i32, i32) {
    %c0_i32 = arith.constant 0 : i32
    %c0_i32_0 = arith.constant 0 : i32
    %c0_i32_1 = arith.constant 0 : i32
    return %c0_i32, %c0_i32_0 : i32, i32
  }
  func.func @transform_5(%arg0: i32) -> (i32, i32) {
    %c0_i32 = arith.constant 0 : i32
    %c0_i32_0 = arith.constant 0 : i32
    %c0_i32_1 = arith.constant 0 : i32
    return %c0_i32, %c0_i32_0 : i32, i32
  }
  func.func @transform_6(%arg0: i32) -> (i32, i32) {
    %c0_i32 = arith.constant 0 : i32
    %c0_i32_0 = arith.constant 0 : i32
    %c0_i32_1 = arith.constant 0 : i32
    return %c0_i32, %c0_i32_0 : i32, i32
  }
  func.func @transform_7(%arg0: i32) -> (i32, i32) {
    %c0_i32 = arith.constant 0 : i32
    %c0_i32_0 = arith.constant 0 : i32
    %c0_i32_1 = arith.constant 0 : i32
    return %c0_i32, %c0_i32_0 : i32, i32
  }
  func.func @transform_8(%arg0: i32) -> (i32, i32) {
    %c0_i32 = arith.constant 0 : i32
    %c0_i32_0 = arith.constant 0 : i32
    %c0_i32_1 = arith.constant 0 : i32
    return %c0_i32, %c0_i32_0 : i32, i32
  }
  func.func @transform_9(%arg0: i32) -> (i32, i32) {
    %c0_i32 = arith.constant 0 : i32
    %c0_i32_0 = arith.constant 0 : i32
    %c0_i32_1 = arith.constant 0 : i32
    return %c0_i32, %c0_i32_0 : i32, i32
  }
  func.func @transform_10(%arg0: i32) -> (i32, i32) {
    %c0_i32 = arith.constant 0 : i32
    %c0_i32_0 = arith.constant 0 : i32
    %c0_i32_1 = arith.constant 0 : i32
    return %c0_i32, %c0_i32_0 : i32, i32
  }
  func.func @transform_11(%arg0: i32) -> (i32, i32) {
    %c0_i32 = arith.constant 0 : i32
    %c0_i32_0 = arith.constant 0 : i32
    %c0_i32_1 = arith.constant 0 : i32
    return %c0_i32, %c0_i32_0 : i32, i32
  }
  func.func @transform_12(%arg0: i32) -> (i32, i32) {
    %c0_i32 = arith.constant 0 : i32
    %c0_i32_0 = arith.constant 0 : i32
    %c0_i32_1 = arith.constant 0 : i32
    return %c0_i32, %c0_i32_0 : i32, i32
  }
  func.func @transform_13(%arg0: i32) -> (i32, i32) {
    %c0_i32 = arith.constant 0 : i32
    %c0_i32_0 = arith.constant 0 : i32
    %c0_i32_1 = arith.constant 0 : i32
    return %c0_i32, %c0_i32_0 : i32, i32
  }
  func.func @transform_14(%arg0: i32) -> (i32, i32) {
    %c0_i32 = arith.constant 0 : i32
    %c0_i32_0 = arith.constant 0 : i32
    %c0_i32_1 = arith.constant 0 : i32
    return %c0_i32, %c0_i32_0 : i32, i32
  }
  func.func @transform_15(%arg0: i32) -> (i32, i32) {
    %c0_i32 = arith.constant 0 : i32
    %c0_i32_0 = arith.constant 0 : i32
    %c0_i32_1 = arith.constant 0 : i32
    return %c0_i32, %c0_i32_0 : i32, i32
  }
  func.func @transform_16(%arg0: i32) -> (i32, i32) {
    %c0_i32 = arith.constant 0 : i32
    %c0_i32_0 = arith.constant 0 : i32
    %c0_i32_1 = arith.constant 0 : i32
    return %c0_i32, %c0_i32_0 : i32, i32
  }
  func.func @transform_17(%arg0: i32) -> (i32, i32) {
    %c0_i32 = arith.constant 0 : i32
    %c0_i32_0 = arith.constant 0 : i32
    %c0_i32_1 = arith.constant 0 : i32
    return %c0_i32, %c0_i32_0 : i32, i32
  }
  func.func @transform_18(%arg0: i32) -> (i32, i32) {
    %c0_i32 = arith.constant 0 : i32
    %c0_i32_0 = arith.constant 0 : i32
    %c0_i32_1 = arith.constant 0 : i32
    return %c0_i32, %c0_i32_0 : i32, i32
  }
  func.func @transform_19(%arg0: i32) -> (i32, i32) {
    %c0_i32 = arith.constant 0 : i32
    %c0_i32_0 = arith.constant 0 : i32
    %c0_i32_1 = arith.constant 0 : i32
    return %c0_i32, %c0_i32_0 : i32, i32
  }
  func.func @transform_20(%arg0: i32) -> (i32, i32) {
    %c0_i32 = arith.constant 0 : i32
    %c0_i32_0 = arith.constant 0 : i32
    %c0_i32_1 = arith.constant 0 : i32
    return %c0_i32, %c0_i32_0 : i32, i32
  }
  func.func @transform_21(%arg0: i32) -> (i32, i32) {
    %c0_i32 = arith.constant 0 : i32
    %c0_i32_0 = arith.constant 0 : i32
    return %arg0, %c0_i32 : i32, i32
  }
}

</mosaic_0001>

<bundles_post_ra>
// kernel: tpu_custom_call.1
= control target key start
LH: loop header
LB: loop body
LE: loop exit
PB: predicated region body
PF: predicated region fallthrough
CT: control target
= control target key end

     0   :  { %s6303_s0 = inlined_call_operand.hbm [shape: f32[16,32], index: 0, kind: input, shape index: {}]   ;;  %s6304_s1 = inlined_call_operand.hbm [shape: f32[1,32], index: 1, kind: input, shape index: {}]   ;;  %s6305_s2 = inlined_call_operand.hbm [shape: f32[1,32], index: 2, kind: input, shape index: {}]   ;;  %s6306_s3 = inlined_call_operand.vmem [shape: f32[32,32], index: 3, kind: input, shape index: {}]   ;;  %s6307_s4 = inlined_call_operand.hbm [shape: f32[1,32], index: 4, kind: input, shape index: {}]   ;;  %s6308_s5 = inlined_call_operand.vmem [shape: f32[32,32], index: 5, kind: input, shape index: {}]   ;;  %s6309_s6 = inlined_call_operand.hbm [shape: f32[1,32], index: 6, kind: input, shape index: {}]   ;;  %s6310_s7 = inlined_call_operand.vmem [shape: f32[32,32], index: 7, kind: input, shape index: {}]   ;;  %s6311_s8 = inlined_call_operand.hbm [shape: f32[1,32], index: 8, kind: input, shape index: {}]   ;;  %s6312_s9 = inlined_call_operand.vmem [shape: f32[32,32], index: 9, kind: input, shape index: {}]   ;;  %s6313_s10 = inlined_call_operand.hbm [shape: f32[1,32], index: 10, kind: input, shape index: {}]   ;;  %s6314_s11 = inlined_call_operand.hbm [shape: f32[1,32], index: 11, kind: input, shape index: {}]   ;;  %s6315_s12 = inlined_call_operand.hbm [shape: f32[1,32], index: 12, kind: input, shape index: {}]   ;;  %s6316_s13 = inlined_call_operand.vmem [shape: f32[32,16], index: 13, kind: input, shape index: {}]   ;;  %s6317_s14 = inlined_call_operand.hbm [shape: f32[1,16], index: 14, kind: input, shape index: {}]   ;;  %s6318_s15 = inlined_call_operand.hbm [shape: f32[16,32], index: 15, kind: input, shape index: {}]   ;;  %s6319_s16 = inlined_call_operand.hbm [shape: f32[1,32], index: 16, kind: input, shape index: {}]   ;;  %s6320_s17 = inlined_call_operand.hbm [shape: f32[32,64], index: 17, kind: input, shape index: {}]   ;;  %s6321_s18 = inlined_call_operand.vmem [shape: f32[1,64], index: 18, kind: input, shape index: {}]   ;;  %s6322_s19 = inlined_call_operand.vmem [shape: f32[64,32], index: 19, kind: input, shape index: {}]   ;;  %s6323_s20 = inlined_call_operand.vmem [shape: f32[1,32], index: 20, kind: input, shape index: {}]   ;;  %s6324_s21 = inlined_call_operand.hbm [shape: f32[16,32], index: 21, kind: output, shape index: {}]  }
   0x1   :  { %6331 = sst [smem:[#allocation32_spill]] %s6303_s0 }
   0x2   :  { %6332 = sst [smem:[#allocation33_spill]] %s6304_s1 }
   0x3   :  { %6333 = sst [smem:[#allocation34_spill]] %s6305_s2 }
   0x4   :  { %6334 = sst [smem:[#allocation35_spill]] %s6306_s3 }
   0x5   :  { %6335 = sst [smem:[#allocation36_spill]] %s6307_s4 }
   0x6   :  { %6336 = sst [smem:[#allocation37_spill]] %s6308_s5 }
   0x7   :  { %6337 = sst [smem:[#allocation38_spill]] %s6309_s6 }
   0x8   :  { %6338 = sst [smem:[#allocation39_spill]] %s6311_s8 }
   0x9   :  { %6339 = sst [smem:[#allocation40_spill]] %s6313_s10 }
   0xa   :  { %6340 = sst [smem:[#allocation41_spill]] %s6314_s11 }
   0xb   :  { %6341 = sst [smem:[#allocation42_spill]] %s6315_s12 }
   0xc   :  { %6342 = sst [smem:[#allocation43_spill]] %s6316_s13 }
   0xd   :  { %6343 = sst [smem:[#allocation44_spill]] %s6317_s14 }
   0xe   :  { %6344 = sst [smem:[#allocation45_spill]] %s6321_s18 }
   0xf   :  { %6345 = sst [smem:[#allocation46_spill]] %s6322_s19 }
  0x10   :  { %6346 = sst [smem:[#allocation47_spill]] %s6323_s20 }
  0x11   :  { %6347 = sst [smem:[#allocation48_spill]] %s6324_s21 }
  0x12   :  { %26 = vsyncpa [#allocation3], 0 }
  0x13   :  { %28 = vsyncpa [#allocation3 + $0x1], 0 }
  0x14   :  { %29 = vsyncpa [#allocation6], 0 }
  0x15   :  { %30 = vsyncpa [#allocation9], 0 }
  0x16   :  { %31 = vsyncpa [#allocation12], 0 }
  0x17   :  { %32 = vsyncpa [#allocation15], 0 }
  0x18   :  { %33 = vsyncpa [#allocation18], 0 }
  0x19   :  { %34 = vsyncpa [#allocation21], 0 }
  0x1a   :  { %35 = vsyncpa [#allocation4], 0 }
  0x1b   :  { %37 = vsyncpa [#allocation4 + $0x1], 0  ;;  %s5459_s2 = smov 0   ;;  %s5461_s25 = smov 0  }
  0x1c   :  { %s5463_s26 = smov 0   ;;  %s5465_s27 = smov 0  }
  0x1d LB: > { %s6348_s29 = sld [smem:[#allocation33_spill]]  ;;  %s5483_s4 = sadd.s32 4294967295, %s5323_s27   ;;  %s5323_s27 = sphi %s5465_s27, %s6376_s27   ;;  %s5319_s26 = sphi %s5463_s26, %s6375_s26   ;;  %s5315_s25 = sphi %s5461_s25, %s6374_s25   ;;  %s5311_s2 = sphi %s5459_s2, %s6373_s2  }
  0x1e   : > { %p4585_p0 = scmp.ge.s32.totalorder %s5323_s27, 1  ;;  %p64_p1 = scmp.eq.s32.totalorder %s5483_s4, 0 }
  0x1f   : > { %p520_p2 = scmp.lt.s32.totalorder %s5323_s27, 3  ;;  %s5325_s5 = smov [#allocation5]  }
  0x20   : > { %s534_s22 = sshll.u32 %s5325_s5, 4  ;;  %s6350_s24 = sld [smem:[#allocation36_spill]]  ;;  %s535_s22 = int_to_ptr.vmem [resolvable:$true] %s534_s22 }
  0x21   : > { %p5488_p3 = pnand %p4585_p0, %p520_p2  ;;  %s6352_s8 = sld [smem:[#allocation39_spill]] }
  0x22   : > { %s6353_s11 = sld [smem:[#allocation41_spill]]  ;;  %s5327_s18 = smov [#allocation11]  }
  0x23   : > { %s532_s0 = sshll.u32 %s6348_s29, 4  ;;  %p4673_p5 = pneg %p5488_p3  ;;  %s533_s0 = int_to_ptr.hbm [resolvable:$true] %s532_s0 }
  0x24   : > { %s5326_s29 = smov [#allocation8]   ;;  %s591_s13 = sshll.u32 %s5327_s18, 4  ;;  %s592_s13 = int_to_ptr.vmem [resolvable:$true] %s591_s13 }
  0x25   : > { %p5500_p6 = pnand %p4673_p5, %p64_p1  ;;  %s561_s21 = sshll.u32 %s5326_s29, 4  ;;  %s562_s21 = int_to_ptr.vmem [resolvable:$true] %s561_s21 }
  0x26   : > { %s559_s3 = sshll.u32 %s6350_s24, 4  ;;  %s5328_s29 = smov [#allocation14]   ;;  %s560_s3 = int_to_ptr.hbm [resolvable:$true] %s559_s3 }
  0x27   : > { %s589_s19 = sshll.u32 %s6352_s8, 4  ;;  %s618_s20 = sshll.u32 %s5328_s29, 4  ;;  %s590_s19 = int_to_ptr.hbm [resolvable:$true] %s589_s19  ;;  %s619_s20 = int_to_ptr.vmem [resolvable:$true] %s618_s20 }
  0x28   : > { %4676 = dma.hbm_to_vmem [thread:$0]  (!%p5500_p6), %s533_s0, 16, %s535_s22, [#allocation6]  }
  0x29   : > { %4682 = dma.hbm_to_vmem [thread:$0]  (!%p5500_p6), %s560_s3, 16, %s562_s21, [#allocation9]  }
  0x2a   : > { %s616_s24 = sshll.u32 %s6353_s11, 4  ;;  %s6354_s14 = sld [smem:[#allocation44_spill]]  ;;  %s617_s24 = int_to_ptr.hbm [resolvable:$true] %s616_s24 }
  0x2b   : > { %4688 = dma.hbm_to_vmem [thread:$0]  (!%p5500_p6), %s590_s19, 16, %s592_s13, [#allocation12]  }
  0x2c   : > { %4694 = dma.hbm_to_vmem [thread:$0]  (!%p5500_p6), %s617_s24, 16, %s619_s20, [#allocation15]  }
  0x2d   : > { %s669_s3 = sshll.u32 %s6319_s16, 4  ;;  %s5329_s18 = smov [#allocation17]   ;;  %s670_s3 = int_to_ptr.hbm [resolvable:$true] %s669_s3 }
  0x2e   : > { %s645_s23 = sshll.u32 %s5329_s18, 4  ;;  %s5330_s13 = smov [#allocation20]   ;;  %s646_s23 = int_to_ptr.vmem [resolvable:$true] %s645_s23 }
  0x2f   : > { %s671_s19 = sshll.u32 %s5330_s13, 4  ;;  %s6355_s29 = sld [smem:[#allocation34_spill]]  ;;  %s672_s19 = int_to_ptr.vmem [resolvable:$true] %s671_s19 }
  0x30   : > { %s643_s0 = sshll.u32 %s6354_s14, 4  ;;  %s6356_s6 = sld [smem:[#allocation38_spill]]  ;;  %s644_s0 = int_to_ptr.hbm [resolvable:$true] %s643_s0 }
  0x31   : > { %4700 = dma.hbm_to_vmem [thread:$0]  (!%p5500_p6), %s644_s0, 16, %s646_s23, [#allocation18]  }
  0x32   : > { %4706 = dma.hbm_to_vmem [thread:$0]  (!%p5500_p6), %s670_s3, 16, %s672_s19, [#allocation21]  }
  0x33   : > { %s5331_s22 = smov [#allocation7]   ;;  %s5332_s0 = smov [#allocation10]  }
  0x34   : > { %s546_s18 = sshll.u32 %s5331_s22, 4  ;;  %s576_s23 = sshll.u32 %s5332_s0, 4  ;;  %s547_s18 = int_to_ptr.vmem [resolvable:$true] %s546_s18  ;;  %s577_s23 = int_to_ptr.vmem [resolvable:$true] %s576_s23 }
  0x35   : > { %s544_s5 = sshll.u32 %s6355_s29, 4  ;;  %s6357_s10 = sld [smem:[#allocation40_spill]]  ;;  %s545_s5 = int_to_ptr.hbm [resolvable:$true] %s544_s5 }
  0x36   : > { %s574_s21 = sshll.u32 %s6356_s6, 4  ;;  %s6358_s12 = sld [smem:[#allocation42_spill]]  ;;  %s575_s21 = int_to_ptr.hbm [resolvable:$true] %s574_s21 }
  0x37   : > { %4679 = dma.hbm_to_vmem [thread:$0]  (!%p5500_p6), %s545_s5, 16, %s547_s18, [#allocation6]  }
  0x38   : > { %4685 = dma.hbm_to_vmem [thread:$0]  (!%p5500_p6), %s575_s21, 16, %s577_s23, [#allocation9]  }
  0x39   : > { %s5333_s24 = smov [#allocation13]   ;;  %s5334_s5 = smov [#allocation16]  }
  0x3a   : > { %s606_s20 = sshll.u32 %s5333_s24, 4  ;;  %s630_s22 = sshll.u32 %s5334_s5, 4  ;;  %s607_s20 = int_to_ptr.vmem [resolvable:$true] %s606_s20  ;;  %s631_s22 = int_to_ptr.vmem [resolvable:$true] %s630_s22 }
  0x3b   : > { %s604_s1 = sshll.u32 %s6357_s10, 4  ;;  %s654_s13 = sshll.u32 %s6318_s15, 4  ;;  %s605_s1 = int_to_ptr.hbm [resolvable:$true] %s604_s1  ;;  %s655_s13 = int_to_ptr.hbm [resolvable:$true] %s654_s13 }
  0x3c   : > { %s628_s29 = sshll.u32 %s6358_s12, 4  ;;  %s5335_s21 = smov [#allocation19]   ;;  %s629_s29 = int_to_ptr.hbm [resolvable:$true] %s628_s29 }
  0x3d   : > { %4691 = dma.hbm_to_vmem [thread:$0]  (!%p5500_p6), %s605_s1, 16, %s607_s20, [#allocation12]  }
  0x3e   : > { %4697 = dma.hbm_to_vmem [thread:$0]  (!%p5500_p6), %s629_s29, 16, %s631_s22, [#allocation15]  }
  0x3f   : > { %s656_s23 = sshll.u32 %s5335_s21, 4  ;;  %s680_s3 = sshll.u32 %s6320_s17, 4  ;;  %s657_s23 = int_to_ptr.vmem [resolvable:$true] %s656_s23  ;;  %s681_s3 = int_to_ptr.hbm [resolvable:$true] %s680_s3 }
  0x40   : > { %s5336_s19 = smov 128   ;;  %s5337_s24 = smov 8  }
  0x41   : > { %4703 = dma.hbm_to_vmem [thread:$0]  (!%p5500_p6), %s655_s13, 256, %s657_s23, [#allocation18], %s5336_s19, %s5336_s19, %s5337_s24  }
  0x42   : > { %s5338_s29 = smov [#allocation22]   ;;  %s4584_s5 = sadd.s32 4294967294, %s5323_s27  }
  0x43   : > { %s682_s20 = sshll.u32 %s5338_s29, 4  ;;  %s5560_s22 = sadd.s32 1, %s5323_s27   ;;  %s683_s20 = int_to_ptr.vmem [resolvable:$true] %s682_s20 }
  0x44   : > { %4709 = dma.hbm_to_vmem [thread:$0]  (!%p5500_p6), %s681_s3, 512, %s683_s20, [#allocation21], %s5336_s19, %s5336_s19, %s5337_s24  }
  0x45   : > { %s47_s18 = ssub.s32 %s5323_s27, %s5560_s22  ;;  %s50_s0 = sadd.s32 1, %s5319_s26 }
  0x46   : > { %p48_p7 = scmp.eq.s32.totalorder %s47_s18, 0  ;;  %p57_p8 = scmp.ne.s32.totalorder %s5319_s26, %s5315_s25 }
  0x47   : > { %p58_p9 = scmp.eq.s32.totalorder %s5323_s27, 0  ;;  %p63_p10 = scmp.ne.s32.totalorder %s5315_s25, %s5311_s2 }
  0x48   : > { %s5571_s13 = scalar_select %p48_p7, %s5319_s26, %s50_s0  }
  0x49   : > { %p5573_p11 = por %p58_p9, %p57_p8  ;;  %p5579_p12 = por %p64_p1, %p63_p10 }
  0x4a   : > { %p507_p13 = scmp.eq.s32.totalorder %s5483_s4, 1  ;;  %p513_p0 = scmp.eq.s32.totalorder %s4584_s5, 1 }
  0x4b   : > { %p4730_p2 = scmp.lt.s32.totalorder %s5323_s27, 2  ;;  %s705_s23 = sand.u32 1, %s5319_s26  }
  0x4c   : > { %p5586_p5 = por %p507_p13, %p57_p8  ;;  %p5590_p6 = por %p513_p0, %p63_p10 }
  0x4d   : > { %s4599_s3 = sshll.u32 %s705_s23, 3  ;;  %s4600_s19 = sshll.u32 %s5323_s27, 3 }
  0x4e   : > { %s6363_s20 = sld [smem:[#allocation32_spill]]  ;;  %s709_s0 = scalar_lea.vmem [#allocation2], %s4599_s3 }
  0x4f   : > { %s717_s6 = sshll.u32 %s709_s0, 4  ;;  %p5600_p7 = pnand %p4730_p2, %p5573_p11  ;;  %s718_s6 = int_to_ptr.vmem [resolvable:$true] %s717_s6 }
  0x50   : > { %s706_s11 = scalar_lea.sflag [#allocation3], %s705_s23 }
  0x51   : > { %p5207_p9 = pneg %p5600_p7 }
  0x54   : > { %s713_s18 = scalar_lea.hbm %s6363_s20, %s4600_s19  ;;  %s5210_s24 = scalar_lea.hbm %s6363_s20, 16 }
  0x55   : > { %s715_s10 = sshll.u32 %s713_s18, 4  ;;  %s716_s10 = int_to_ptr.hbm [resolvable:$true] %s715_s10 }
  0x56   : > { %s5203_s12 = sshra.s32 %s716_s10, 4  ;;  %s5204_s12 = int_to_ptr.hbm [resolvable:$true] %s5203_s12 }
  0x57   : > { %s5205_s14 = scalar_lea.hbm %s5204_s12, 8  ;;  %p5211_p11 = scmp.lt.s32.totalorder %s5204_s12, %s6363_s20 }
  0x58   : > { %p5206_p8 = scmp.ne.s32.totalorder %s5204_s12, %s5205_s14  ;;  %p5212_p0 = scmp.lt.s32.totalorder %s5210_s24, %s5205_s14 }
  0x5a   : > { %p5208_p10 = pnand %p5207_p9, %p5206_p8  ;;  %p5213_p2 = por %p5212_p0, %p5211_p11 }
  0x5c   : > { %p5209_p13 = pneg %p5208_p10 }
  0x5e   : > { %p5214_p4 = pnand %p5213_p2, %p5209_p13 }
  0x60   : > { %5217 = shalt.err (!%p5214_p4)
}
  0x61   : > { %4713 = dma.hbm_to_vmem [thread:$0]  (!%p5600_p7), %s716_s10, 128, %s718_s6, %s706_s11  }
  0x62   : > { %726 = sbr.rel (%p5488_p3) target bundleno = 2811 (0xafb), region = 104  ;;  %s5617_s23 = sand.u32 (!%p5488_p3), 1, %s5315_s25  }
  0x63   : > { %s4602_s18 = sshll.u32 (!%p5488_p3), %s5617_s23, 3  ;;  %s729_s0 = scalar_lea.sflag (!%p5488_p3), [#allocation3], %s5617_s23 }
  0x64   : > { %s5623_s12 = scalar_lea.vmem (!%p5488_p3), [#allocation2], %s4602_s18 }
  0x67   : > { %5278 = dma.done.wait (%p5579_p12), %s729_s0, 128  }
  0x68   : > { %5280 = vsyncadd (%p5579_p12), %s729_s0, 4294967168 }
  0x69   : > { %5282 = dma.done.wait (%p64_p1), [#allocation6], 32  }
  0x6a   : > { %5284 = vsyncadd (%p64_p1), [#allocation6], 4294967264 }
  0x6b   : > { %5286 = dma.done.wait (%p64_p1), [#allocation9], 32  }
  0x6c   : > { %5288 = vsyncadd (%p64_p1), [#allocation9], 4294967264 }
  0x6d   : > { %5290 = dma.done.wait (%p64_p1), [#allocation12], 32  }
  0x6e   : > { %5292 = vsyncadd (%p64_p1), [#allocation12], 4294967264 }
  0x6f   : > { %5294 = dma.done.wait (%p64_p1), [#allocation15], 32  }
  0x70   : > { %5296 = vsyncadd (%p64_p1), [#allocation15], 4294967264 }
  0x71   : > { %5298 = dma.done.wait (%p64_p1), [#allocation18], 272  }
  0x72   : > { %5300 = vsyncadd (%p64_p1), [#allocation18], 4294967024 }
  0x73   : > { %5302 = dma.done.wait (%p64_p1), [#allocation21], 528  }
  0x74   : > { %5304 = vsyncadd (%p64_p1), [#allocation21], 4294966768  ;;  %vm855_vm0 = vcmask 261120   ;;  %v852_v0 = vld [vmem:[%s5623_s12] sm:$0xff]  ;;  %v5339_v2 = vmov 32.0   ;;  %s6365_s11 = sld [smem:[#allocation35_spill]] }
  0x75   : > { %v856_v1 = vsel %vm855_vm0, %v852_v0, 0.0  ;;  %4812 = vrcp.f32 %v5339_v2  ;;  %s6366_s21 = sld [smem:[#allocation37_spill]]  ;;  %s5340_s14 = smov 120   ;;  %vm1486_vm5 = vcmask 1047556   ;;  %vm1836_vm6 = vcmask 64512  }
  0x76   : > { %857 = vadd.xlane.f32.xlu0 %v856_v1  ;;  %s5341_s30 = smov 112   ;;  %s5342_s28 = smov 104  }
  0x77   : > { %s5345_s5 = smov 16   ;;  %s5346_s3 = smov 24  }
  0x78   : > { %s5347_s19 = smov 8   ;;  %s6371_s24 = sld [smem:[#allocation48_spill]] }
  0x79   : > { %s851_s0 = scalar_lea.vmem [#allocation23], %s4602_s18 }
  0x7a   : > { %v896_v14 = vld [vmem:[%s6365_s11 + $0x18] sm:$0xff]  ;;  %v895_v16 = vld [vmem:[%s6365_s11 + $0x10] sm:$0xff]  ;;  %v894_v19 = vld [vmem:[%s6365_s11 + $0x8] sm:$0xff]  ;;  %s4397_s6 = sshll.u32 %s851_s0, 4  ;;  %s4398_s6 = int_to_ptr.vmem [resolvable:$true] %s4397_s6 }
  0x7b   : > { %v4813_v3 = vpop.eup %4812  ;;  %v916_v15 = vand.u32 4294901760, %v896_v14  ;;  %v918_v18 = vand.u32 4294901760, %v895_v16  ;;  %v920_v22 = vand.u32 4294901760, %v894_v19  ;;  %v893_v23 = vld [vmem:[%s6365_s11] sm:$0xff]  ;;  %v1092_v35 = vld [vmem:[%s6366_s21 + $0x18] sm:$0xff]  ;;  %v1091_v39 = vld [vmem:[%s6366_s21 + $0x10] sm:$0xff] }
  0x7c   : > { %v860_v4 = vmul.f32 32.0, %v4813_v3  ;;  %vm864_vm1 = vweird.f32 %v4813_v3  ;;  %v922_v27 = vand.u32 4294901760, %v893_v23  ;;  %v5678_v38 = vand.u32 4294901760, %v1092_v35  ;;  %v1090_v43 = vld [vmem:[%s6366_s21 + $0x8] sm:$0xff]  ;;  %v1089_v48 = vld [vmem:[%s6366_s21] sm:$0xff] }
  0x7d   : > { %v946_v17 = vsub.f32 %v896_v14, %v916_v15  ;;  %1017 = vmatpush.msra.mxu3 %v916_v15  ;;  %917 = vmatpush.msra.mxu0 %v916_v15  ;;  %v952_v21 = vsub.f32 %v895_v16, %v918_v18  ;;  %v958_v26 = vsub.f32 %v894_v19, %v920_v22  ;;  %v5684_v41 = vand.u32 4294901760, %v1091_v39  ;;  %v4801_v14 = vld [vmem:[#allocation7] ss:$0 sm:$0xff]  ;;  %v1283_v16 = vld [vmem:[%s6310_s7 + $0x8] sm:$0xff] }
  0x7e   : > { %v861_v5 = vsub.f32 1.0, %v860_v4  ;;  %v964_v31 = vsub.f32 %v893_v23, %v922_v27  ;;  %v5687_v42 = vsub.f32 %v1092_v35, %v5678_v38  ;;  %v5694_v45 = vand.u32 4294901760, %v1090_v43  ;;  %s5253_s18 = scalar_lea.hbm %s6371_s24, 16 }
  0x7f   : > { %v947_v20 = vand.u32 4294901760, %v946_v17  ;;  %988 = vmatpush.msra.mxu2 %v946_v17  ;;  %1019 = vmatpush.msra.mxu3 %v918_v18  ;;  %v953_v25 = vand.u32 4294901760, %v952_v21  ;;  %v959_v30 = vand.u32 4294901760, %v958_v26  ;;  %v5697_v46 = vsub.f32 %v1091_v39, %v5684_v41 }
  0x80   : > { %v862_v6 = vmul.f32 %v4813_v3, %v861_v5  ;;  %919 = vmatpush.msra.mxu0 %v918_v18  ;;  %v965_v34 = vand.u32 4294901760, %v964_v31  ;;  %v1140_v44 = vand.u32 4294901760, %v5687_v42  ;;  %v5708_v52 = vand.u32 4294901760, %v1089_v48 }
  0x81   : > { %v948_v24 = vsub.f32 %v946_v17, %v947_v20  ;;  %991 = vmatpush.msra.mxu2 %v952_v21  ;;  %1021 = vmatpush.msra.mxu3 %v920_v22  ;;  %v954_v29 = vsub.f32 %v952_v21, %v953_v25  ;;  %v960_v33 = vsub.f32 %v958_v26, %v959_v30  ;;  %v1146_v51 = vand.u32 4294901760, %v5697_v46 }
  0x82   : > { %v863_v7 = vadd.f32 %v4813_v3, %v862_v6  ;;  %921 = vmatpush.msra.mxu0 %v920_v22  ;;  %v966_v37 = vsub.f32 %v964_v31, %v965_v34  ;;  %v1141_v50 = vsub.f32 %v5687_v42, %v1140_v44  ;;  %v5711_v53 = vsub.f32 %v1090_v43, %v5694_v45  ;;  %v1285_v6 = vld [vmem:[%s6310_s7 + $0x18] sm:$0xff] }
  0x83   : > { %v949_v28 = vand.u32 4294901760, %v948_v24  ;;  %994 = vmatpush.msra.mxu2 %v958_v26  ;;  %1023 = vmatpush.msra.mxu3 %v922_v27  ;;  %v955_v32 = vand.u32 4294901760, %v954_v29  ;;  %v961_v36 = vand.u32 4294901760, %v960_v33  ;;  %v1147_v56 = vsub.f32 %v5697_v46, %v1146_v51 }
  0x84   : > { %v5655_v8 = vsel %vm864_vm1, %v4813_v3, %v863_v7  ;;  %923 = vmatpush.msra.mxu0 %v922_v27  ;;  %v967_v40 = vand.u32 4294901760, %v966_v37  ;;  %v1142_v55 = vand.u32 4294901760, %v1141_v50  ;;  %v5718_v57 = vsub.f32 %v1089_v48, %v5708_v52 }
  0x85   : > { %950 = vmatpush.msra.mxu1 %v949_v28  ;;  %997 = vmatpush.msra.mxu2 %v964_v31  ;;  %v1152_v58 = vand.u32 4294901760, %v5711_v53  ;;  %v1148_v59 = vand.u32 4294901760, %v1147_v56  ;;  %v5743_v21 = vand.u32 4294901760, %v1283_v16 }
  0x86   : > { %1046 = vmatpush.msrb.mxu0 %v947_v20  ;;  %1143 = vmatpush.msrb.mxu3 %v1142_v55  ;;  %v1158_v60 = vand.u32 4294901760, %v5718_v57 }
  0x87   : > { %956 = vmatpush.msra.mxu1 %v955_v32  ;;  %1110 = vmatpush.msrb.mxu2 %v5678_v38  ;;  %v1153_v61 = vsub.f32 %v5711_v53, %v1152_v58 }
  0x88   : > { %1050 = vmatpush.msrb.mxu0 %v953_v25  ;;  %1149 = vmatpush.msrb.mxu3 %v1148_v59  ;;  %v1159_v62 = vsub.f32 %v5718_v57, %v1158_v60 }
  0x89   : > { %962 = vmatpush.msra.mxu1 %v961_v36  ;;  %1112 = vmatpush.msrb.mxu2 %v5684_v41  ;;  %v1154_v63 = vand.u32 4294901760, %v1153_v61 }
  0x8a   : > { %1054 = vmatpush.msrb.mxu0 %v959_v30 }
  0x8b   : > { %968 = vmatpush.msra.mxu1 %v967_v40  ;;  %1114 = vmatpush.msrb.mxu2 %v5694_v45 }
  0x8c   : > { %1058 = vmatpush.msrb.mxu0 %v965_v34  ;;  %1155 = vmatpush.msrb.mxu3 %v1154_v63 }
  0x8d   : > { %1077 = vmatpush.msrb.mxu1 %v916_v15  ;;  %1116 = vmatpush.msrb.mxu2 %v5708_v52 }
  0x8f   : > { %1079 = vmatpush.msrb.mxu1 %v918_v18 }
  0x91   : > { %1081 = vmatpush.msrb.mxu1 %v920_v22  ;;  %v1282_v22 = vld [vmem:[%s6310_s7] sm:$0xff] }
  0x92   : > { %v5755_v26 = vand.u32 4294901760, %v1282_v22 }
  0x93   : > { %1083 = vmatpush.msrb.mxu1 %v922_v27  ;;  %v5758_v27 = vsub.f32 %v1283_v16, %v5743_v21 }
  0x94   : > { %v5768_v32 = vsub.f32 %v1282_v22, %v5755_v26 }
  0x95   : > { %v1345_v33 = vand.u32 4294901760, %v5758_v27 }
  0x96   : > { %v1351_v39 = vand.u32 4294901760, %v5768_v32 }
  0x97   : > { %v1346_v40 = vsub.f32 %v5758_v27, %v1345_v33 }
  0xe9   : > { %v858_v9 = vpop.xlane.xlu0 %857 }
  0xea   : > { %v866_v10 = vmul.f32 %v5655_v8, %v858_v9  ;;  %v4800_v9 = vld [vmem:[#allocation5] ss:$0 sm:$0xff] }
  0xec   : > { %v5658_v11 = vsub.f32 %v852_v0, %v866_v10  ;;  %v1160_v0 = vand.u32 4294901760, %v1159_v62 }
  0xee   : > { %v868_v12 = vmul.f32 %v5658_v11, %v5658_v11  ;;  %1161 = vmatpush.msrb.mxu3 %v1160_v0 }
  0xf0   : > { %v869_v13 = vsel %vm855_vm0, %v868_v12, 0.0  ;;  %v5729_v12 = vand.u32 4294901760, %v1285_v6 }
  0xf1   : > { %870 = vadd.xlane.f32.xlu0 %v869_v13  ;;  %v1284_v13 = vld [vmem:[%s6310_s7 + $0x10] sm:$0xff] }
  0xf2   : > { %v5738_v18 = vand.u32 4294901760, %v1284_v13  ;;  %v5741_v19 = vsub.f32 %v1285_v6, %v5729_v12 }
  0xf4   : > { %v1333_v25 = vand.u32 4294901760, %v5741_v19 }
  0xf6   : > { %v1334_v31 = vsub.f32 %v5741_v19, %v1333_v25 }
  0xf8   : > { %v1335_v37 = vand.u32 4294901760, %v1334_v31 }
 0x164   : > { %v871_v47 = vpop.xlane.xlu0 %870 }
 0x165   : > { %v872_v49 = vmul.f32 %v871_v47, %v5655_v8 }
 0x167   : > { %v873_v54 = vadd.f32 1e-05, %v872_v49 }
 0x169   : > { %4814 = vrsqrt.f32 %v873_v54  ;;  %vm880_vm3 = vweird.f32 %v873_v54 }
 0x16f   : > { %v4815_v1 = vpop.eup %4814 }
 0x170   : > { %v875_v2 = vmul.f32 %v4815_v1, %v873_v54  ;;  %vm881_vm2 = vweird.f32 %v4815_v1  ;;  %v4803_v54 = vld [vmem:[#allocation10] ss:$0 sm:$0xff] }
 0x171   : > { %vm882_vm4 = vmor %vm880_vm3, %vm881_vm2 }
 0x172   : > { %v876_v3 = vmul.f32 %v4815_v1, %v875_v2 }
 0x174   : > { %v877_v4 = vmul.f32 0.5, %v876_v3 }
 0x176   : > { %v878_v5 = vsub.f32 1.5, %v877_v4 }
 0x178   : > { %v879_v7 = vmul.f32 %v4815_v1, %v878_v5 }
 0x17a   : > { %v883_v10 = vsel %vm882_vm4, %v4815_v1, %v879_v7  ;;  %v5343_v7 = vmov 1983009808  }
 0x17b   : > { %v884_v15 = vmul.f32 %v883_v10, %v5658_v11  ;;  %v5750_v11 = vsub.f32 %v1284_v13, %v5738_v18 }
 0x17d   : > { %v888_v17 = vmul.f32 %v4800_v9, %v884_v15  ;;  %v1339_v29 = vand.u32 4294901760, %v5750_v11  ;;  %v1491_v9 = vunpack.c.l.s4 %v5343_v7 }
 0x17f   : > { %v892_v20 = vadd.f32 %v4801_v14, %v888_v17  ;;  %v1340_v35 = vsub.f32 %v5750_v11, %v1339_v29  ;;  %v5829_v16 = vunpack.c.0.s8 %v1491_v9 }
 0x181   : > { %v902_v23 = vsel %vm855_vm0, %v892_v20, 0  ;;  %v1341_v43 = vand.u32 4294901760, %v1340_v35 }
 0x182   : > { %v5752_v24 = vand.u32 4294901760, %v902_v23 }
 0x184   : > { %970 = vmatmul.f32.vlgmr.msra.gmra.mxu1 %v5752_v24  ;;  %v925_v28 = vsub.f32 %v902_v23, %v5752_v24 }
 0x185   : > { %1210 = vmatpush.msra.mxu1 %v5678_v38 }
 0x186   : > { %1000 = vmatmul.f32.vlgmr.msra.gmra.mxu2 %v925_v28  ;;  %v926_v30 = vand.u32 4294901760, %v925_v28 }
 0x187   : > { %1212 = vmatpush.msra.mxu1 %v5684_v41  ;;  %1239 = vmatpush.msra.mxu2 %v1140_v44  ;;  %v1347_v44 = vand.u32 4294901760, %v1346_v40 }
 0x188   : > { %1027 = vmatmul.f32.vlgmr.msra.gmra.mxu3 %v926_v30  ;;  %v927_v34 = vsub.f32 %v925_v28, %v926_v30 }
 0x189   : > { %1214 = vmatpush.msra.mxu1 %v5694_v45  ;;  %1243 = vmatpush.msra.mxu2 %v1146_v51 }
 0x18a   : > { %v928_v36 = vand.u32 4294901760, %v927_v34  ;;  %1270 = vmatpush.msra.mxu3 %v5678_v38  ;;  %v1352_v38 = vsub.f32 %v5768_v32, %v1351_v39 }
 0x18b   : > { %1216 = vmatpush.msra.mxu1 %v5708_v52  ;;  %1247 = vmatpush.msra.mxu2 %v1152_v58 }
 0x18c   : > { %929 = vmatmul.f32.vlgmr.msra.gmra.mxu0 %v928_v36  ;;  %1085 = vmatmul.f32.vlgmr.msrb.gmra.mxu1 %v5752_v24 }
 0x18d   : > { %1272 = vmatpush.msra.mxu3 %v5684_v41  ;;  %1181 = vmatpush.msra.mxu0 %v5687_v42  ;;  %v1353_v41 = vand.u32 4294901760, %v1352_v38 }
 0x18e   : > { %1122 = vmatmul.f32.vlgmr.msrb.gmra.mxu2 %v928_v36  ;;  %1336 = vmatpush.msrb.mxu1 %v1335_v37 }
 0x18f   : > { %1251 = vmatpush.msra.mxu2 %v1158_v60  ;;  %1274 = vmatpush.msra.mxu3 %v5694_v45  ;;  %v4802_v45 = vld [vmem:[#allocation8] ss:$0 sm:$0xff] }
 0x190   : > { %1163 = vmatmul.f32.vlgmr.msrb.gmra.mxu3 %v5752_v24  ;;  %1184 = vmatpush.msra.mxu0 %v5697_v46 }
 0x191   : > { %1276 = vmatpush.msra.mxu3 %v5708_v52  ;;  %1342 = vmatpush.msrb.mxu1 %v1341_v43 }
 0x192   : > { %1374 = vmatpush.msrb.mxu2 %v5741_v19  ;;  %1187 = vmatpush.msra.mxu0 %v5711_v53  ;;  %v5344_v19 = vmov 1934713408  }
 0x193   : > { %1348 = vmatpush.msrb.mxu1 %v1347_v44  ;;  %1403 = vmatpush.msrb.mxu3 %v5729_v12  ;;  %v1515_v20 = vunpack.c.l.s4 %v5344_v19 }
 0x194   : > { %1060 = vmatmul.f32.vlgmr.msrb.gmra.mxu0 %v5752_v24  ;;  %1220 = vmatmul.f32.vlgmr.msra.gmra.mxu1 %v926_v30 }
 0x195   : > { %1377 = vmatpush.msrb.mxu2 %v5750_v11  ;;  %1190 = vmatpush.msra.mxu0 %v5718_v57 }
 0x196   : > { %1253 = vmatmul.f32.vlgmr.msra.gmra.mxu2 %v5752_v24  ;;  %1354 = vmatpush.msrb.mxu1 %v1353_v41 }
 0x197   : > { %1380 = vmatpush.msrb.mxu2 %v5758_v27  ;;  %1405 = vmatpush.msrb.mxu3 %v5738_v18 }
 0x198   : > { %1278 = vmatmul.f32.vlgmr.msra.gmra.mxu3 %v5752_v24  ;;  %1303 = vmatpush.msrb.mxu0 %v5729_v12 }
 0x199   : > { %1383 = vmatpush.msrb.mxu2 %v5768_v32  ;;  %1407 = vmatpush.msrb.mxu3 %v5743_v21 }
 0x19a   : > { %1463 = vmatpush.msra.mxu1 %v5729_v12  ;;  %1305 = vmatpush.msrb.mxu0 %v5738_v18 }
 0x19b   : > { %1409 = vmatpush.msrb.mxu3 %v5755_v26 }
 0x19c   : > { %1193 = vmatmul.f32.vlgmr.msra.gmra.mxu0 %v925_v28  ;;  %1356 = vmatmul.f32.vlgmr.msrb.gmra.mxu1 %v5752_v24 }
 0x19d   : > { %1465 = vmatpush.msra.mxu1 %v5738_v18  ;;  %1307 = vmatpush.msrb.mxu0 %v5743_v21 }
 0x19e   : > { %1386 = vmatmul.f32.vlgmr.msrb.gmra.mxu2 %v925_v28 }
 0x19f   : > { %1467 = vmatpush.msra.mxu1 %v5743_v21  ;;  %1309 = vmatpush.msrb.mxu0 %v5755_v26 }
 0x1a0   : > { %1413 = vmatmul.f32.vlgmr.msrb.gmra.mxu3 %v926_v30 }
 0x1a1   : > { %1432 = vmatpush.msra.mxu0 %v1333_v25  ;;  %1469 = vmatpush.msra.mxu1 %v5755_v26  ;;  %v5834_v26 = vunpack.c.0.s8 %v1515_v20 }
 0x1a3   : > { %1436 = vmatpush.msra.mxu0 %v1339_v29 }
 0x1a4   : > { %1315 = vmatmul.f32.vlgmr.msrb.gmra.mxu0 %v928_v36  ;;  %1471 = vmatmul.f32.vlgmr.msra.gmra.mxu1 %v5752_v24 }
 0x1a5   : > { %1440 = vmatpush.msra.mxu0 %v1345_v33 }
 0x1a7   : > { %1444 = vmatpush.msra.mxu0 %v1351_v39 }
 0x1ac   : > { %1446 = vmatmul.f32.vlgmr.msra.gmra.mxu0 %v5752_v24 }
 0x201   : > { %v971_v42 = vpop.f32.mrf.mxu1 }
 0x209   : > { %v930_v46 = vpop.f32.mrf.mxu0  ;;  %v1001_v47 = vpop.f32.mrf.mxu2 }
 0x20a   : > { %v931_v48 = vadd.f32 %v4802_v45, %v930_v46  ;;  %v1086_v52 = vpop.f32.mrf.mxu1 }
 0x20b   : > { %v1028_v49 = vpop.f32.mrf.mxu3 }
 0x20c   : > { %v972_v50 = vadd.f32 %v971_v42, %v931_v48 }
 0x20e   : > { %v1002_v51 = vadd.f32 %v1001_v47, %v972_v50 }
 0x210   : > { %v1029_v53 = vadd.f32 %v1028_v49, %v1002_v51 }
 0x211   : > { %v1061_v55 = vpop.f32.mrf.mxu0  ;;  %v1123_v56 = vpop.f32.mrf.mxu2 }
 0x212   : > { %v1062_v57 = vadd.f32 %v1061_v55, %v1029_v53  ;;  %v1124_v59 = vadd.f32 %v4803_v54, %v1123_v56  ;;  %v1221_v0 = vpop.f32.mrf.mxu1 }
 0x213   : > { %v1164_v60 = vpop.f32.mrf.mxu3 }
 0x214   : > { %v1087_v58 = vadd.f32 %v1086_v52, %v1062_v57  ;;  %v1165_v61 = vadd.f32 %v1164_v60, %v1124_v59 }
 0x216   : > { %1476 = vrot.lane.b32.xlu2 %v1087_v58, %s5340_s14  ;;  %v1488_v11 = vrot.slane %v1087_v58, 4 }
 0x219   : > { %v1194_v62 = vpop.f32.mrf.mxu0  ;;  %v1254_v2 = vpop.f32.mrf.mxu2 }
 0x21a   : > { %v1195_v63 = vadd.f32 %v1194_v62, %v1165_v61 }
 0x21b   : > { %v1279_v4 = vpop.f32.mrf.mxu3 }
 0x21c   : > { %v1222_v1 = vadd.f32 %v1221_v0, %v1195_v63 }
 0x21e   : > { %v1255_v3 = vadd.f32 %v1254_v2, %v1222_v1  ;;  %1479 = vrot.lane.b32.xlu2 %v1087_v58, %s5341_s30 }
 0x220   : > { %v1280_v5 = vadd.f32 %v1279_v4, %v1255_v3 }
 0x222   : > { %1603 = vrot.lane.b32.xlu0 %v1280_v5, %s5342_s28  ;;  %1597 = vrot.lane.b32.xlu1 %v1280_v5, %s5340_s14  ;;  %v1608_v23 = vrot.slane %v1280_v5, 4 }
 0x22a   : > { %1600 = vrot.lane.b32.xlu1 %v1280_v5, %s5341_s30 }
 0x232   : > { %1482 = vrot.lane.b32.xlu1 %v1087_v58, %s5342_s28 }
 0x270   : > { %v1477_v6 = vpop.permute.xlu2 %1476 }
 0x271   : > { %v1500_v47 = vrot.slane %v1477_v6, 4 }
 0x278   : > { %v1480_v17 = vpop.permute.xlu2 %1479 }
 0x279   : > { %v1485_v22 = vrot.slane %v1480_v17, 4  ;;  %v1489_v29 = vsel %vm1486_vm5, %v1480_v17, %v1488_v11 }
 0x27a   : > { %v1497_v39 = vperm.slane %v1489_v29, %v5829_v16 }
 0x27b   : > { %v1487_v32 = vsel %vm1486_vm5, %v1485_v22, %v1087_v58 }
 0x27c   : > { %v1493_v43 = vperm.slane %v1487_v32, %v5829_v16  ;;  %v1524_v54 = vrot.slane %v1497_v39, 4 }
 0x27e   : > { %v1512_v53 = vrot.slane %v1493_v43, 4 }
 0x294   : > { %v1604_v10 = vpop.permute.xlu0 %1603  ;;  %v1598_v12 = vpop.permute.xlu1 %1597 }
 0x295   : > { %v1618_v13 = vrot.slane %v1604_v10, 4  ;;  %v1620_v14 = vrot.slane %v1598_v12, 4 }
 0x297   : > { %v1621_v15 = vsel %vm1486_vm5, %v1604_v10, %v1620_v14  ;;  %v1619_v18 = vsel %vm1486_vm5, %v1618_v13, %v1598_v12 }
 0x298   : > { %v1629_v21 = vperm.slane %v1621_v15, %v5829_v16  ;;  %v1625_v24 = vperm.slane %v1619_v18, %v5829_v16 }
 0x29a   : > { %v1642_v30 = vrot.slane %v1629_v21, 4  ;;  %v1630_v34 = vrot.slane %v1625_v24, 4 }
 0x29c   : > { %v1601_v25 = vpop.permute.xlu1 %1600 }
 0x29d   : > { %v1606_v27 = vrot.slane %v1601_v25, 4  ;;  %v1609_v28 = vsel %vm1486_vm5, %v1601_v25, %v1608_v23 }
 0x29e   : > { %v1617_v31 = vperm.slane %v1609_v28, %v5829_v16 }
 0x29f   : > { %v1607_v33 = vsel %vm1486_vm5, %v1606_v27, %v1280_v5 }
 0x2a0   : > { %v1613_v35 = vperm.slane %v1607_v33, %v5829_v16  ;;  %v1643_v36 = vsel %vm1486_vm5, %v1642_v30, %v1617_v31  ;;  %v1644_v37 = vrot.slane %v1617_v31, 4 }
 0x2a1   : > { %v1649_v40 = vperm.slane %v1643_v36, %v5834_v26 }
 0x2a2   : > { %v1631_v38 = vsel %vm1486_vm5, %v1630_v34, %v1613_v35  ;;  %v1632_v44 = vrot.slane %v1613_v35, 4  ;;  %v1645_v41 = vsel %vm1486_vm5, %v1629_v21, %v1644_v37 }
 0x2a3   : > { %v1637_v42 = vperm.slane %v1631_v38, %v5834_v26  ;;  %v1653_v45 = vperm.slane %v1645_v41, %v5834_v26  ;;  %v1658_v46 = vrot.slane %v1649_v40, 4 }
 0x2a4   : > { %v1633_v48 = vsel %vm1486_vm5, %v1625_v24, %v1632_v44  ;;  %v1483_v49 = vpop.permute.xlu1 %1482 }
 0x2a5   : > { %v1641_v50 = vperm.slane %v1633_v48, %v5834_v26  ;;  %v1654_v51 = vrot.slane %v1637_v42, 4  ;;  %v1660_v52 = vrot.slane %v1653_v45, 4  ;;  %v1498_v55 = vrot.slane %v1483_v49, 4 }
 0x2a6   : > { %v1501_v56 = vsel %vm1486_vm5, %v1483_v49, %v1500_v47  ;;  %v1659_v58 = vsel %vm1486_vm5, 0.0, %v1658_v46 }
 0x2a7   : > { %v1656_v57 = vrot.slane %v1641_v50, 4  ;;  %v1661_v59 = vsel %vm1486_vm5, 0.0, %v1660_v52  ;;  %v1673_v60 = vsel %vm1486_vm5, %v1660_v52, %v1649_v40  ;;  %v1499_v63 = vsel %vm1486_vm5, %v1498_v55, %v1477_v6 }
 0x2a8   : > { %v1677_v61 = vperm.slane %v1673_v60, %v5829_v16  ;;  %v1678_v62 = vrot.slane %v1661_v59, 4  ;;  %v1509_v0 = vperm.slane %v1501_v56, %v5829_v16  ;;  %v1655_v1 = vsel %vm1486_vm5, 0.0, %v1654_v51 }
 0x2a9   : > { %v1657_v2 = vsel %vm1486_vm5, 0.0, %v1656_v57  ;;  %v1662_v3 = vsel %vm1486_vm5, %v1656_v57, %v1637_v42  ;;  %v1505_v4 = vperm.slane %v1499_v63, %v5829_v16 }
 0x2aa   : > { %v1666_v5 = vperm.slane %v1662_v3, %v5829_v16  ;;  %v1667_v7 = vrot.slane %v1657_v2, 4  ;;  %v1679_v9 = vsel %vm1486_vm5, %v1678_v62, %v1659_v58  ;;  %v1698_v10 = vrot.slane %v1677_v61, 4 }
 0x2ab   : > { %v1683_v12 = vperm.slane %v1679_v9, %v5829_v16  ;;  %v1510_v13 = vrot.slane %v1505_v4, 4  ;;  %v1513_v6 = vsel %vm1486_vm5, %v1505_v4, %v1512_v53  ;;  %v1522_v14 = vrot.slane %v1509_v0, 4 }
 0x2ac   : > { %v1668_v15 = vsel %vm1486_vm5, %v1667_v7, %v1655_v1  ;;  %v1521_v17 = vperm.slane %v1513_v6, %v5834_v26  ;;  %v1525_v18 = vsel %vm1486_vm5, %v1509_v0, %v1524_v54  ;;  %v1686_v19 = vrot.slane %v1666_v5, 4 }
 0x2ad   : > { %v1672_v20 = vperm.slane %v1668_v15, %v5829_v16  ;;  %v1696_v21 = vrot.slane %v1683_v12, 4  ;;  %v1511_v22 = vsel %vm1486_vm5, %v1510_v13, %v1493_v43  ;;  %v1523_v23 = vsel %vm1486_vm5, %v1522_v14, %v1497_v39 }
 0x2ae   : > { %v1517_v11 = vperm.slane %v1511_v22, %v5834_v26  ;;  %v1529_v24 = vperm.slane %v1523_v23, %v5834_v26  ;;  %v1533_v25 = vperm.slane %v1525_v18, %v5834_v26  ;;  %v1536_v27 = vrot.slane %v1521_v17, 4 }
 0x2af   : > { %v1684_v28 = vrot.slane %v1672_v20, 4  ;;  %v1697_v29 = vsel %vm1486_vm5, %v1696_v21, %v1677_v61  ;;  %v1687_v37 = vsel %vm1486_vm5, %v1672_v20, %v1686_v19  ;;  %v1699_v38 = vsel %vm1486_vm5, %v1683_v12, %v1698_v10 }
 0x2b0   : > { %v1534_v30 = vrot.slane %v1517_v11, 4  ;;  %v1537_v31 = vsel %vm1486_vm5, 0.0, %v1536_v27  ;;  %v1538_v32 = vrot.slane %v1529_v24, 4  ;;  %v1540_v33 = vrot.slane %v1533_v25, 4 }
 0x2b1   : > { %v1547_v34 = vrot.slane %v1537_v31, 4  ;;  %v1685_v35 = vsel %vm1486_vm5, %v1684_v28, %v1666_v5  ;;  %v1703_v36 = vperm.slane %v1697_v29, %v5834_v26  ;;  %v1542_v44 = vsel %vm1486_vm5, %v1536_v27, %v1517_v11 }
 0x2b2   : > { %v1535_v39 = vsel %vm1486_vm5, 0.0, %v1534_v30  ;;  %v1539_v40 = vsel %vm1486_vm5, 0.0, %v1538_v32  ;;  %v1541_v43 = vsel %vm1486_vm5, 0.0, %v1540_v33  ;;  %v1691_v45 = vperm.slane %v1685_v35, %v5834_v26 }
 0x2b3   : > { %v1548_v41 = vsel %vm1486_vm5, %v1547_v34, %v1535_v39  ;;  %v1558_v42 = vrot.slane %v1541_v43, 4  ;;  %v1553_v47 = vsel %vm1486_vm5, %v1540_v33, %v1529_v24  ;;  %v1708_v48 = vrot.slane %v1703_v36, 4 }
 0x2b4   : > { %v1552_v46 = vperm.slane %v1548_v41, %v5829_v16  ;;  %v1710_v50 = vrot.slane %v1691_v45, 4  ;;  %v1695_v51 = vperm.slane %v1687_v37, %v5834_v26  ;;  %v1707_v52 = vperm.slane %v1699_v38, %v5834_v26 }
 0x2b5   : > { %v1559_v49 = vsel %vm1486_vm5, %v1558_v42, %v1539_v40  ;;  %v1546_v53 = vperm.slane %v1542_v44, %v5829_v16  ;;  %v1709_v55 = vsel %vm1486_vm5, %v1708_v48, %v1691_v45  ;;  %v1557_v57 = vperm.slane %v1553_v47, %v5829_v16 }
 0x2b6   : > { %v1563_v54 = vperm.slane %v1559_v49, %v5829_v16  ;;  %v1564_v56 = vrot.slane %v1552_v46, 4  ;;  %v1841_v58 = vsel %vm1836_vm6, %v1709_v55, 0  ;;  %v1711_v59 = vsel %vm1486_vm5, %v1703_v36, %v1710_v50 }
 0x2b7   : > { %v1712_v60 = vrot.slane %v1707_v52, 4  ;;  %v1858_v62 = vand.u32 4294901760, %v1841_v58  ;;  %v1993_v63 = vsel %vm1836_vm6, %v1711_v59, 0  ;;  %v1714_v13 = vrot.slane %v1695_v51, 4 }
 0x2b8   : > { %v1576_v61 = vrot.slane %v1563_v54, 4  ;;  %v1565_v0 = vsel %vm1486_vm5, %v1564_v56, %v1546_v53  ;;  %v2010_v1 = vand.u32 4294901760, %v1993_v63  ;;  %v1578_v6 = vrot.slane %v1557_v57, 4 }
 0x2b9   : > { %v1571_v2 = vperm.slane %v1565_v0, %v5834_v26  ;;  %v1713_v3 = vsel %vm1486_vm5, %v1712_v60, %v1695_v51  ;;  %1859 = vmatpush.xpose.msra.mxu2 %v1858_v62  ;;  %1935 = vmatpush.xpose.msrb.mxu1 %v1858_v62  ;;  %v1885_v4 = vsub.f32 %v1841_v58, %v1858_v62  ;;  %v1566_v22 = vrot.slane %v1546_v53, 4 }
 0x2ba   : > { %v1577_v5 = vsel %vm1486_vm5, %v1576_v61, %v1557_v57  ;;  %v2145_v7 = vsel %vm1836_vm6, %v1713_v3, 0  ;;  %v2037_v9 = vsub.f32 %v1993_v63, %v2010_v1  ;;  %v1715_v25 = vsel %vm1486_vm5, %v1707_v52, %v1714_v13  ;;  %v1387_v13 = vpop.f32.mrf.mxu2 }
 0x2bb   : > { %v1583_v10 = vperm.slane %v1577_v5, %v5834_v26  ;;  %v1590_v12 = vrot.slane %v1571_v2, 4  ;;  %1912 = vmatpush.xpose.msrb.mxu0 %v1885_v4  ;;  %v1886_v14 = vand.u32 4294901760, %v1885_v4  ;;  %v5906_v15 = vand.u32 4294901760, %v2145_v7  ;;  %v1316_v5 = vpop.f32.mrf.mxu0 }
 0x2bc   : > { %v2038_v18 = vand.u32 4294901760, %v2037_v9  ;;  %v1579_v30 = vsel %vm1486_vm5, %v1563_v54, %v1578_v6  ;;  %v1567_v34 = vsel %vm1486_vm5, %v1552_v46, %v1566_v22  ;;  %v2297_v37 = vsel %vm1836_vm6, %v1715_v25, 0 }
 0x2bd   : > { %v1588_v17 = vrot.slane %v1583_v10, 4  ;;  %v1591_v19 = vsel %vm1486_vm5, %v1583_v10, %v1590_v12  ;;  %1961 = vmatpush.xpose.msrb.mxu2 %v1886_v14  ;;  %v1887_v20 = vsub.f32 %v1885_v4, %v1886_v14  ;;  %v2189_v29 = vsub.f32 %v2145_v7, %v5906_v15  ;;  %v1357_v7 = vpop.f32.mrf.mxu1 }
 0x2be   : > { %v1990_v21 = vsel %vm1836_vm6, %v1591_v19, 0  ;;  %v2039_v11 = vsub.f32 %v2037_v9, %v2038_v18  ;;  %v1587_v39 = vperm.slane %v1579_v30, %v5834_v26  ;;  %v1575_v44 = vperm.slane %v1567_v34, %v5834_v26 }
 0x2bf   : > { %2011 = vmatpush.xpose.msra.mxu0 %v2010_v1  ;;  %v1589_v23 = vsel %vm1486_vm5, %v1588_v17, %v1571_v2  ;;  %v2012_v24 = vand.u32 4294901760, %v1990_v21  ;;  %v1888_v27 = vand.u32 4294901760, %v1887_v20  ;;  %v2190_v40 = vand.u32 4294901760, %v2189_v29 }
 0x2c0   : > { %v1838_v28 = vsel %vm1836_vm6, %v1589_v23, 0  ;;  %v2040_v32 = vand.u32 4294901760, %v2039_v11  ;;  %v2314_v41 = vand.u32 4294901760, %v2297_v37  ;;  %v1592_v45 = vrot.slane %v1587_v39, 4 }
 0x2c1   : > { %v1860_v31 = vand.u32 4294901760, %v1838_v28  ;;  %v2013_v33 = vsub.f32 %v1990_v21, %v2012_v24  ;;  %1889 = vmatpush.xpose.msra.mxu3 %v1888_v27  ;;  %v2191_v46 = vsub.f32 %v2189_v29, %v2190_v40  ;;  %v1594_v49 = vrot.slane %v1575_v44, 4 }
 0x2c2   : > { %2041 = vmatpush.xpose.msra.mxu1 %v2040_v32  ;;  %v2341_v50 = vsub.f32 %v2297_v37, %v2314_v41  ;;  %v1593_v51 = vsel %vm1486_vm5, %v1592_v45, %v1575_v44 }
 0x2c3   : > { %v1861_v35 = vsub.f32 %v1838_v28, %v1860_v31  ;;  %v2014_v36 = vand.u32 4294901760, %v2013_v33  ;;  %v2192_v52 = vand.u32 4294901760, %v2191_v46  ;;  %v1595_v53 = vsel %vm1486_vm5, %v1587_v39, %v1594_v49  ;;  %v1447_v10 = vpop.f32.mrf.mxu0 }
 0x2c4   : > { %1891 = vmatmul.f32.vlgmr.msra.gmra.mxu3 %v1860_v31  ;;  %v2342_v54 = vand.u32 4294901760, %v2341_v50  ;;  %v2142_v55 = vsel %vm1836_vm6, %v1593_v51, 0  ;;  %v2294_v56 = vsel %vm1836_vm6, %v1595_v53, 0 }
 0x2c5   : > { %1983 = vmatpush.xpose.msrb.mxu3 %v1858_v62  ;;  %1915 = vmatmul.f32.vlgmr.msrb.gmra.mxu0 %v1861_v35  ;;  %v1862_v43 = vand.u32 4294901760, %v1861_v35  ;;  %v2015_v38 = vsub.f32 %v2013_v33, %v2014_v36  ;;  %v2164_v57 = vand.u32 4294901760, %v2142_v55  ;;  %v2316_v59 = vand.u32 4294901760, %v2294_v56  ;;  %v1472_v12 = vpop.f32.mrf.mxu1 }
 0x2c6   : > { %2113 = vmatpush.xpose.msrb.mxu0 %v2038_v18  ;;  %v2343_v58 = vsub.f32 %v2341_v50, %v2342_v54 }
 0x2c7   : > { %1939 = vmatmul.f32.vlgmr.msrb.gmra.mxu1 %v1862_v43  ;;  %v1863_v42 = vsub.f32 %v1861_v35, %v1862_v43  ;;  %v2016_v48 = vand.u32 4294901760, %v2015_v38  ;;  %v2165_v60 = vsub.f32 %v2142_v55, %v2164_v57  ;;  %v2317_v62 = vsub.f32 %v2294_v56, %v2316_v59  ;;  %v4804_v43 = vld [vmem:[#allocation11] ss:$0 sm:$0xff] }
 0x2c8   : > { %2135 = vmatpush.xpose.msrb.mxu1 %v2010_v1  ;;  %v2344_v61 = vand.u32 4294901760, %v2343_v58  ;;  %v1317_v45 = vadd.f32 %v4804_v43, %v1316_v5 }
 0x2c9   : > { %2087 = vmatpush.xpose.msra.mxu3 %v2010_v1  ;;  %v1864_v47 = vand.u32 4294901760, %v1863_v42  ;;  %v2166_v63 = vand.u32 4294901760, %v2165_v60  ;;  %v2318_v0 = vand.u32 4294901760, %v2317_v62 }
 0x2ca   : > { %v1358_v49 = vadd.f32 %v1357_v7, %v1317_v45 }
 0x2cb   : > { %1865 = vmatmul.f32.vlgmr.msra.gmra.mxu2 %v1864_v47  ;;  %v2167_v1 = vsub.f32 %v2165_v60, %v2166_v63  ;;  %v2319_v2 = vsub.f32 %v2317_v62, %v2318_v0 }
 0x2cc   : > { %2064 = vmatpush.xpose.msra.mxu2 %v2037_v9  ;;  %1985 = vmatmul.f32.vlgmr.msrb.gmra.mxu3 %v1860_v31  ;;  %v1414_v9 = vpop.f32.mrf.mxu3 }
 0x2cd   : > { %2017 = vmatmul.f32.vlgmr.msra.gmra.mxu0 %v2016_v48  ;;  %2193 = vmatpush.xpose.msrb.mxu3 %v2192_v52  ;;  %v2168_v3 = vand.u32 4294901760, %v2167_v1  ;;  %v2320_v4 = vand.u32 4294901760, %v2319_v2 }
 0x2ce   : > { %2216 = vmatpush.xpose.msra.mxu0 %v2189_v29 }
 0x2cf   : > { %2043 = vmatmul.f32.vlgmr.msra.gmra.mxu1 %v2012_v24 }
 0x2d0   : > { %2239 = vmatpush.xpose.msra.mxu1 %v5906_v15 }
 0x2d3   : > { %1963 = vmatmul.f32.vlgmr.msrb.gmra.mxu2 %v1860_v31 }
 0x2d4   : > { %2163 = vmatpush.xpose.msrb.mxu2 %v5906_v15  ;;  %2091 = vmatmul.f32.vlgmr.msra.gmra.mxu3 %v2014_v36 }
 0x2d5   : > { %2115 = vmatmul.f32.vlgmr.msrb.gmra.mxu0 %v2012_v24  ;;  %2287 = vmatpush.xpose.msra.mxu3 %v5906_v15 }
 0x2d6   : > { %2315 = vmatpush.xpose.msrb.mxu0 %v2314_v41 }
 0x2d7   : > { %2137 = vmatmul.f32.vlgmr.msrb.gmra.mxu1 %v2012_v24 }
 0x2d8   : > { %2345 = vmatpush.xpose.msrb.mxu1 %v2344_v61 }
 0x2db   : > { %2067 = vmatmul.f32.vlgmr.msra.gmra.mxu2 %v2013_v33 }
 0x2dc   : > { %2265 = vmatpush.xpose.msra.mxu2 %v2190_v40  ;;  %2195 = vmatmul.f32.vlgmr.msrb.gmra.mxu3 %v2164_v57 }
 0x2dd   : > { %2219 = vmatmul.f32.vlgmr.msra.gmra.mxu0 %v2165_v60  ;;  %2391 = vmatpush.xpose.msrb.mxu3 %v2314_v41 }
 0x2de   : > { %2417 = vmatpush.xpose.msra.mxu0 %v2342_v54  ;;  %v1388_v54 = vadd.f32 %v1387_v13, %v1358_v49 }
 0x2df   : > { %2243 = vmatmul.f32.vlgmr.msra.gmra.mxu1 %v2166_v63 }
 0x2e0   : > { %2439 = vmatpush.xpose.msra.mxu1 %v2314_v41  ;;  %v1415_v58 = vadd.f32 %v1414_v9, %v1388_v54 }
 0x2e2   : > { %v1448_v63 = vadd.f32 %v1447_v10, %v1415_v58 }
 0x2e3   : > { %2169 = vmatmul.f32.vlgmr.msrb.gmra.mxu2 %v2168_v3 }
 0x2e4   : > { %2368 = vmatpush.xpose.msrb.mxu2 %v2341_v50  ;;  %2289 = vmatmul.f32.vlgmr.msra.gmra.mxu3 %v2164_v57  ;;  %v1473_v3 = vadd.f32 %v1472_v12, %v1448_v63 }
 0x2e5   : > { %2321 = vmatmul.f32.vlgmr.msrb.gmra.mxu0 %v2320_v4 }
 0x2e7   : > { %2347 = vmatmul.f32.vlgmr.msrb.gmra.mxu1 %v2316_v59 }
 0x2eb   : > { %2267 = vmatmul.f32.vlgmr.msra.gmra.mxu2 %v2164_v57 }
 0x2ec   : > { %2395 = vmatmul.f32.vlgmr.msrb.gmra.mxu3 %v2318_v0 }
 0x2ed   : > { %2419 = vmatmul.f32.vlgmr.msra.gmra.mxu0 %v2316_v59 }
 0x2ef   : > { %2441 = vmatmul.f32.vlgmr.msra.gmra.mxu1 %v2316_v59 }
 0x2f3   : > { %2371 = vmatmul.f32.vlgmr.msrb.gmra.mxu2 %v2317_v62 }
 0x342   : > { %v1916_v6 = vpop.f32.mrf.mxu0 }
 0x344   : > { %v1940_v15 = vpop.f32.mrf.mxu1 }
 0x347   : > { %v1892_v14 = vpop.f32.mrf.mxu3 }
 0x34a   : > { %v2018_v21 = vpop.f32.mrf.mxu0 }
 0x34c   : > { %v2044_v22 = vpop.f32.mrf.mxu1 }
 0x34d   : > { %v2045_v30 = vadd.f32 %v2044_v22, %v2018_v21 }
 0x34e   : > { %v1866_v17 = vpop.f32.mrf.mxu2 }
 0x34f   : > { %v1893_v18 = vadd.f32 %v1892_v14, %v1866_v17  ;;  %v1986_v19 = vpop.f32.mrf.mxu3 }
 0x351   : > { %v1917_v20 = vadd.f32 %v1916_v6, %v1893_v18 }
 0x352   : > { %v2116_v29 = vpop.f32.mrf.mxu0 }
 0x353   : > { %v1941_v23 = vadd.f32 %v1940_v15, %v1917_v20 }
 0x354   : > { %v2138_v31 = vpop.f32.mrf.mxu1 }
 0x356   : > { %v1964_v11 = vpop.f32.mrf.mxu2 }
 0x357   : > { %v1965_v24 = vadd.f32 %v1964_v11, %v1941_v23  ;;  %v2092_v27 = vpop.f32.mrf.mxu3 }
 0x359   : > { %v1987_v25 = vadd.f32 %v1986_v19, %v1965_v24 }
 0x35a   : > { %v2220_v39 = vpop.f32.mrf.mxu0 }
 0x35b   : > { %v2445_v28 = vsel %vm1836_vm6, %v1987_v25, -inf }
 0x35c   : > { %2446 = vmax.xlane.f32.xlu2 %v2445_v28  ;;  %v2244_v41 = vpop.f32.mrf.mxu1 }
 0x35e   : > { %v2068_v32 = vpop.f32.mrf.mxu2 }
 0x35f   : > { %v2069_v33 = vadd.f32 %v2068_v32, %v2045_v30  ;;  %v2196_v36 = vpop.f32.mrf.mxu3 }
 0x361   : > { %v2093_v34 = vadd.f32 %v2092_v27, %v2069_v33  ;;  %v1728_v27 = vrot.slane %v1473_v3, 4 }
 0x362   : > { %v2322_v51 = vpop.f32.mrf.mxu0 }
 0x363   : > { %v2117_v35 = vadd.f32 %v2116_v29, %v2093_v34 }
 0x364   : > { %v2348_v53 = vpop.f32.mrf.mxu1 }
 0x365   : > { %v2139_v37 = vadd.f32 %v2138_v31, %v2117_v35  ;;  %v2349_v56 = vadd.f32 %v2348_v53, %v2322_v51 }
 0x366   : > { %v2170_v40 = vpop.f32.mrf.mxu2 }
 0x367   : > { %v2197_v38 = vadd.f32 %v2196_v36, %v2170_v40  ;;  %v2448_v44 = vsel %vm1836_vm6, %v2139_v37, -inf  ;;  %v2290_v47 = vpop.f32.mrf.mxu3 }
 0x368   : > { %2449 = vmax.xlane.f32.xlu1 %v2448_v44 }
 0x369   : > { %v2221_v42 = vadd.f32 %v2220_v39, %v2197_v38 }
 0x36a   : > { %v2420_v62 = vpop.f32.mrf.mxu0 }
 0x36b   : > { %v2245_v46 = vadd.f32 %v2244_v41, %v2221_v42 }
 0x36c   : > { %v2442_v1 = vpop.f32.mrf.mxu1 }
 0x36e   : > { %v2268_v48 = vpop.f32.mrf.mxu2 }
 0x36f   : > { %v2269_v50 = vadd.f32 %v2268_v48, %v2245_v46  ;;  %v2396_v60 = vpop.f32.mrf.mxu3 }
 0x371   : > { %v2291_v52 = vadd.f32 %v2290_v47, %v2269_v50 }
 0x373   : > { %v2451_v55 = vsel %vm1836_vm6, %v2291_v52, -inf }
 0x374   : > { %2452 = vmax.xlane.f32.xlu0 %v2451_v55 }
 0x376   : > { %v2372_v57 = vpop.f32.mrf.mxu2 }
 0x377   : > { %v2373_v59 = vadd.f32 %v2372_v57, %v2349_v56 }
 0x379   : > { %v2397_v61 = vadd.f32 %v2396_v60, %v2373_v59 }
 0x37b   : > { %v2421_v0 = vadd.f32 %v2420_v62, %v2397_v61 }
 0x37d   : > { %v2443_v2 = vadd.f32 %v2442_v1, %v2421_v0 }
 0x37f   : > { %v2454_v4 = vsel %vm1836_vm6, %v2443_v2, -inf }
 0x380   : > { %2455 = vmax.xlane.f32.xlu2 %v2454_v4 }
 0x381   : > { %1720 = vrot.lane.b32.xlu1 %v1473_v3, %s5341_s30  ;;  %s6370_s30 = sld [smem:[#allocation47_spill]] }
 0x388   : > { %1723 = vrot.lane.b32.xlu0 %v1473_v3, %s5342_s28  ;;  %s6368_s28 = sld [smem:[#allocation45_spill]] }
 0x398   : > { %1717 = vrot.lane.b32.xlu2 %v1473_v3, %s5340_s14 }
 0x3cf   : > { %v2447_v5 = vpop.xlane.xlu2 %2446 }
 0x3d0   : > { %v2457_v7 = vsub.f32 %v1987_v25, %v2447_v5 }
 0x3d2   : > { %v2461_v9 = vmul.f32 1.442695, %v2457_v7 }
 0x3d4   : > { %4816 = vpow2.f32 %v2461_v9 }
 0x3da   : > { %v5933_v13 = vpop.eup %4816 }
 0x3db   : > { %v2450_v10 = vpop.xlane.xlu1 %2449  ;;  %v2469_v6 = vsel %vm1836_vm6, %v5933_v13, 0.0 }
 0x3dc   : > { %v2458_v12 = vsub.f32 %v2139_v37, %v2450_v10  ;;  %2470 = vadd.xlane.f32.xlu2 %v2469_v6 }
 0x3de   : > { %v2463_v14 = vmul.f32 1.442695, %v2458_v12 }
 0x3e0   : > { %4818 = vpow2.f32 %v2463_v14 }
 0x3e6   : > { %v5937_v15 = vpop.eup %4818 }
 0x3e7   : > { %v2453_v17 = vpop.xlane.xlu0 %2452  ;;  %v2472_v18 = vsel %vm1836_vm6, %v5937_v15, 0.0 }
 0x3e8   : > { %v2459_v19 = vsub.f32 %v2291_v52, %v2453_v17  ;;  %2473 = vadd.xlane.f32.xlu1 %v2472_v18 }
 0x3ea   : > { %v2465_v20 = vmul.f32 1.442695, %v2459_v19 }
 0x3ec   : > { %4820 = vpow2.f32 %v2465_v20 }
 0x3f2   : > { %v5941_v21 = vpop.eup %4820 }
 0x3f3   : > { %v1721_v22 = vpop.permute.xlu1 %1720  ;;  %v2456_v23 = vpop.xlane.xlu2 %2455  ;;  %v2475_v11 = vsel %vm1836_vm6, %v5941_v21, 0.0 }
 0x3f4   : > { %v1726_v24 = vrot.slane %v1721_v22, 4  ;;  %v2460_v25 = vsub.f32 %v2443_v2, %v2456_v23  ;;  %2476 = vadd.xlane.f32.xlu0 %v2475_v11  ;;  %v1729_v30 = vsel %vm1486_vm5, %v1721_v22, %v1728_v27 }
 0x3f5   : > { %v1737_v33 = vperm.slane %v1729_v30, %v5829_v16 }
 0x3f6   : > { %v2467_v28 = vmul.f32 1.442695, %v2460_v25  ;;  %v1727_v29 = vsel %vm1486_vm5, %v1726_v24, %v1473_v3 }
 0x3f7   : > { %v1733_v31 = vperm.slane %v1727_v29, %v5829_v16  ;;  %v1764_v44 = vrot.slane %v1737_v33, 4 }
 0x3f8   : > { %4822 = vpow2.f32 %v2467_v28 }
 0x3f9   : > { %v1752_v40 = vrot.slane %v1733_v31, 4 }
 0x3fa   : > { %v1724_v32 = vpop.permute.xlu0 %1723 }
 0x3fb   : > { %v1738_v34 = vrot.slane %v1724_v32, 4  ;;  %v1718_v35 = vpop.permute.xlu2 %1717 }
 0x3fc   : > { %v1740_v36 = vrot.slane %v1718_v35, 4 }
 0x3fd   : > { %v1739_v37 = vsel %vm1486_vm5, %v1738_v34, %v1718_v35 }
 0x3fe   : > { %v5950_v39 = vpop.eup %4822  ;;  %v1741_v43 = vsel %vm1486_vm5, %v1724_v32, %v1740_v36  ;;  %v1745_v38 = vperm.slane %v1739_v37, %v5829_v16 }
 0x3ff   : > { %v1749_v41 = vperm.slane %v1741_v43, %v5829_v16  ;;  %v2478_v42 = vsel %vm1836_vm6, %v5950_v39, 0.0 }
 0x400   : > { %v1750_v45 = vrot.slane %v1745_v38, 4  ;;  %v1753_v46 = vsel %vm1486_vm5, %v1745_v38, %v1752_v40  ;;  %2479 = vadd.xlane.f32.xlu2 %v2478_v42 }
 0x401   : > { %v1761_v47 = vperm.slane %v1753_v46, %v5834_v26  ;;  %v1762_v48 = vrot.slane %v1749_v41, 4  ;;  %v1765_v49 = vsel %vm1486_vm5, %v1749_v41, %v1764_v44 }
 0x402   : > { %v1751_v50 = vsel %vm1486_vm5, %v1750_v45, %v1733_v31  ;;  %v1773_v51 = vperm.slane %v1765_v49, %v5834_v26 }
 0x403   : > { %v1757_v52 = vperm.slane %v1751_v50, %v5834_v26  ;;  %v1763_v53 = vsel %vm1486_vm5, %v1762_v48, %v1737_v33  ;;  %v1776_v54 = vrot.slane %v1761_v47, 4 }
 0x404   : > { %v1769_v55 = vperm.slane %v1763_v53, %v5834_v26  ;;  %v1780_v56 = vrot.slane %v1773_v51, 4 }
 0x405   : > { %v1774_v57 = vrot.slane %v1757_v52, 4  ;;  %v1777_v58 = vsel %vm1486_vm5, 0.0, %v1776_v54  ;;  %v1782_v59 = vsel %vm1486_vm5, %v1776_v54, %v1757_v52 }
 0x406   : > { %v1778_v60 = vrot.slane %v1769_v55, 4  ;;  %v1781_v61 = vsel %vm1486_vm5, 0.0, %v1780_v56  ;;  %v1786_v62 = vperm.slane %v1782_v59, %v5829_v16  ;;  %v1787_v63 = vrot.slane %v1777_v58, 4 }
 0x407   : > { %v1775_v0 = vsel %vm1486_vm5, 0.0, %v1774_v57  ;;  %v1793_v1 = vsel %vm1486_vm5, %v1780_v56, %v1769_v55  ;;  %v1798_v2 = vrot.slane %v1781_v61, 4 }
 0x408   : > { %v1779_v3 = vsel %vm1486_vm5, 0.0, %v1778_v60  ;;  %v1788_v4 = vsel %vm1486_vm5, %v1787_v63, %v1775_v0  ;;  %v1797_v5 = vperm.slane %v1793_v1, %v5829_v16  ;;  %v1806_v7 = vrot.slane %v1786_v62, 4 }
 0x409   : > { %v1792_v9 = vperm.slane %v1788_v4, %v5829_v16  ;;  %v1799_v10 = vsel %vm1486_vm5, %v1798_v2, %v1779_v3 }
 0x40a   : > { %v1803_v6 = vperm.slane %v1799_v10, %v5829_v16  ;;  %v1818_v12 = vrot.slane %v1797_v5, 4 }
 0x40b   : > { %v1804_v14 = vrot.slane %v1792_v9, 4  ;;  %v1807_v17 = vsel %vm1486_vm5, %v1792_v9, %v1806_v7 }
 0x40c   : > { %v1816_v18 = vrot.slane %v1803_v6, 4  ;;  %v1815_v19 = vperm.slane %v1807_v17, %v5834_v26  ;;  %v1819_v20 = vsel %vm1486_vm5, %v1803_v6, %v1818_v12 }
 0x40d   : > { %v1805_v22 = vsel %vm1486_vm5, %v1804_v14, %v1786_v62  ;;  %v1827_v23 = vperm.slane %v1819_v20, %v5834_v26 }
 0x40e   : > { %v1811_v11 = vperm.slane %v1805_v22, %v5834_v26  ;;  %v1817_v24 = vsel %vm1486_vm5, %v1816_v18, %v1797_v5  ;;  %v1834_v25 = vrot.slane %v1815_v19, 4 }
 0x40f   : > { %v1823_v27 = vperm.slane %v1817_v24, %v5834_v26  ;;  %v1832_v28 = vrot.slane %v1827_v23, 4 }
 0x410   : > { %v1830_v29 = vrot.slane %v1811_v11, 4  ;;  %v5986_v30 = vsel %vm1486_vm5, %v1827_v23, %v1834_v25 }
 0x411   : > { %v1828_v31 = vrot.slane %v1823_v27, 4  ;;  %v1833_v32 = vsel %vm1486_vm5, %v1832_v28, %v1815_v19  ;;  %v6012_v14 = vand.u32 4294901760, %v5986_v30 }
 0x412   : > { %v1831_v33 = vsel %vm1486_vm5, %v1823_v27, %v1830_v29  ;;  %v5999_v55 = vand.u32 4294901760, %v1833_v32 }
 0x413   : > { %v1829_v34 = vsel %vm1486_vm5, %v1828_v31, %v1811_v11  ;;  %v5991_v35 = vand.u32 4294901760, %v1831_v33  ;;  %v6018_v24 = vsub.f32 %v5986_v30, %v6012_v14 }
 0x414   : > { %v2559_v36 = vand.u32 4294901760, %v1829_v34  ;;  %v6003_v60 = vsub.f32 %v1833_v32, %v5999_v55 }
 0x415   : > { %v5994_v37 = vsub.f32 %v1831_v33, %v5991_v35  ;;  %v3034_v33 = vand.u32 4294901760, %v6018_v24 }
 0x416   : > { %2560 = vmatpush.msra.mxu2 %v2559_v36  ;;  %2636 = vmatpush.msrb.mxu1 %v2559_v36  ;;  %v2586_v40 = vsub.f32 %v1829_v34, %v2559_v36  ;;  %v2885_v2 = vand.u32 4294901760, %v6003_v60 }
 0x417   : > { %v2736_v43 = vand.u32 4294901760, %v5994_v37 }
 0x418   : > { %2613 = vmatpush.msrb.mxu0 %v2586_v40  ;;  %v2587_v38 = vand.u32 4294901760, %v2586_v40  ;;  %v2886_v6 = vsub.f32 %v6003_v60, %v2885_v2 }
 0x419   : > { %v2737_v44 = vsub.f32 %v5994_v37, %v2736_v43 }
 0x41a   : > { %2709 = vmatpush.msra.mxu0 %v5991_v35  ;;  %2662 = vmatpush.msrb.mxu2 %v2587_v38  ;;  %v2588_v41 = vsub.f32 %v2586_v40, %v2587_v38  ;;  %v2887_v22 = vand.u32 4294901760, %v2886_v6 }
 0x41b   : > { %v2738_v42 = vand.u32 4294901760, %v2737_v44 }
 0x41c   : > { %v2589_v45 = vand.u32 4294901760, %v2588_v41 }
 0x41d   : > { %2739 = vmatpush.msra.mxu1 %v2738_v42 }
 0x41e   : > { %2590 = vmatpush.msra.mxu3 %v2589_v45 }
 0x420   : > { %2684 = vmatpush.msrb.mxu3 %v2559_v36 }
 0x44f   : > { %v2471_v46 = vpop.xlane.xlu2 %2470 }
 0x450   : > { %4824 = vrcp.f32 %v2471_v46  ;;  %v2492_v50 = vand.u32 2147483648, %v2471_v46  ;;  %v2490_v52 = vand.u32 2147483647, %v2471_v46  ;;  %vm2486_vm8 = vweird.f32 %v2471_v46 }
 0x452   : > { %v2493_v56 = vor.u32 1.1754944e-38, %v2492_v50  ;;  %vm2491_vm10 = vcmp.eq.f32.partialorder %v2490_v52, 8.507059e+37 }
 0x456   : > { %v4825_v47 = vpop.eup %4824 }
 0x457   : > { %v2482_v48 = vmul.f32 %v4825_v47, %v2471_v46  ;;  %vm2487_vm7 = vweird.f32 %v4825_v47 }
 0x458   : > { %vm2488_vm9 = vmor %vm2486_vm8, %vm2487_vm7 }
 0x459   : > { %v2483_v49 = vsub.f32 1.0, %v2482_v48 }
 0x45b   : > { %v2484_v51 = vmul.f32 %v4825_v47, %v2483_v49  ;;  %v2474_v53 = vpop.xlane.xlu1 %2473 }
 0x45c   : > { %4826 = vrcp.f32 %v2474_v53  ;;  %v2507_v3 = vand.u32 2147483648, %v2474_v53  ;;  %v2505_v7 = vand.u32 2147483647, %v2474_v53  ;;  %vm2501_vm12 = vweird.f32 %v2474_v53 }
 0x45d   : > { %v2485_v54 = vadd.f32 %v4825_v47, %v2484_v51 }
 0x45e   : > { %v2508_v12 = vor.u32 1.1754944e-38, %v2507_v3  ;;  %vm2506_vm14 = vcmp.eq.f32.partialorder %v2505_v7, 8.507059e+37 }
 0x45f   : > { %v2489_v57 = vsel %vm2488_vm9, %v4825_v47, %v2485_v54 }
 0x460   : > { %v2494_v58 = vsel %vm2491_vm10, %v2493_v56, %v2489_v57  ;;  %vm3262_vm10 = vcmask 195584  }
 0x461   : > { %v2495_v59 = vmul.f32 %v5933_v13, %v2494_v58 }
 0x462   : > { %v4827_v61 = vpop.eup %4826 }
 0x463   : > { %v2497_v62 = vmul.f32 %v4827_v61, %v2474_v53  ;;  %v2542_v63 = vsel %vm1836_vm6, %v2495_v59, 0  ;;  %vm2502_vm11 = vweird.f32 %v4827_v61 }
 0x464   : > { %v2561_v0 = vand.u32 4294901760, %v2542_v63  ;;  %vm2503_vm13 = vmor %vm2501_vm12, %vm2502_vm11 }
 0x465   : > { %v2498_v1 = vsub.f32 1.0, %v2497_v62 }
 0x466   : > { %2592 = vmatmul.f32.vlgmr.msra.gmra.mxu3 %v2561_v0  ;;  %v2562_v4 = vsub.f32 %v2542_v63, %v2561_v0 }
 0x467   : > { %v2499_v5 = vmul.f32 %v4827_v61, %v2498_v1  ;;  %2785 = vmatpush.msra.mxu3 %v5991_v35  ;;  %v2477_v13 = vpop.xlane.xlu0 %2476 }
 0x468   : > { %4828 = vrcp.f32 %v2477_v13  ;;  %2616 = vmatmul.f32.vlgmr.msrb.gmra.mxu0 %v2562_v4  ;;  %v2563_v10 = vand.u32 4294901760, %v2562_v4  ;;  %v2522_v31 = vand.u32 2147483648, %v2477_v13  ;;  %v2520_v34 = vand.u32 2147483647, %v2477_v13 }
 0x469   : > { %v2500_v9 = vadd.f32 %v4827_v61, %v2499_v5  ;;  %2811 = vmatpush.msrb.mxu0 %v2736_v43  ;;  %vm2516_vm1 = vweird.f32 %v2477_v13 }
 0x46a   : > { %2640 = vmatmul.f32.vlgmr.msrb.gmra.mxu1 %v2563_v10  ;;  %v2564_v18 = vsub.f32 %v2562_v4, %v2563_v10  ;;  %v2523_v40 = vor.u32 1.1754944e-38, %v2522_v31  ;;  %vm2521_vm3 = vcmp.eq.f32.partialorder %v2520_v34, 8.507059e+37 }
 0x46b   : > { %v2504_v17 = vsel %vm2503_vm13, %v4827_v61, %v2500_v9  ;;  %2833 = vmatpush.msrb.mxu1 %v5991_v35 }
 0x46c   : > { %v2509_v19 = vsel %vm2506_vm14, %v2508_v12, %v2504_v17  ;;  %v2565_v20 = vand.u32 4294901760, %v2564_v18 }
 0x46d   : > { %v2510_v23 = vmul.f32 %v5937_v15, %v2509_v19 }
 0x46e   : > { %v4829_v11 = vpop.eup %4828  ;;  %2686 = vmatmul.f32.vlgmr.msrb.gmra.mxu3 %v2561_v0  ;;  %2566 = vmatmul.f32.vlgmr.msra.gmra.mxu2 %v2565_v20 }
 0x46f   : > { %v2512_v25 = vmul.f32 %v4829_v11, %v2477_v13  ;;  %2888 = vmatpush.msrb.mxu3 %v2887_v22  ;;  %v2691_v27 = vsel %vm1836_vm6, %v2510_v23, 0  ;;  %2762 = vmatpush.msra.mxu2 %v5994_v37  ;;  %vm2517_vm15 = vweird.f32 %v4829_v11  ;;  %v3035_v37 = vsub.f32 %v6018_v24, %v3034_v33 }
 0x470   : > { %v2710_v28 = vand.u32 4294901760, %v2691_v27  ;;  %vm2518_vm2 = vmor %vm2516_vm1, %vm2517_vm15 }
 0x471   : > { %v2513_v29 = vsub.f32 1.0, %v2512_v25  ;;  %v3036_v46 = vand.u32 4294901760, %v3035_v37 }
 0x472   : > { %v2711_v32 = vsub.f32 %v2691_v27, %v2710_v28  ;;  %2741 = vmatmul.f32.vlgmr.msra.gmra.mxu1 %v2710_v28 }
 0x473   : > { %v2514_v15 = vmul.f32 %v4829_v11, %v2513_v29  ;;  %v2480_v35 = vpop.xlane.xlu2 %2479  ;;  %2934 = vmatpush.msra.mxu1 %v5999_v55 }
 0x474   : > { %4830 = vrcp.f32 %v2480_v35  ;;  %v2712_v36 = vand.u32 4294901760, %v2711_v32  ;;  %v2537_v51 = vand.u32 2147483648, %v2480_v35  ;;  %v2535_v54 = vand.u32 2147483647, %v2480_v35 }
 0x475   : > { %v2515_v30 = vadd.f32 %v4829_v11, %v2514_v15  ;;  %vm2531_vm7 = vweird.f32 %v2480_v35 }
 0x476   : > { %2664 = vmatmul.f32.vlgmr.msrb.gmra.mxu2 %v2561_v0  ;;  %2789 = vmatmul.f32.vlgmr.msra.gmra.mxu3 %v2712_v36  ;;  %v2713_v38 = vsub.f32 %v2711_v32, %v2712_v36  ;;  %v2538_v56 = vor.u32 1.1754944e-38, %v2537_v51  ;;  %vm2536_vm9 = vcmp.eq.f32.partialorder %v2535_v54, 8.507059e+37 }
 0x477   : > { %v2519_v43 = vsel %vm2518_vm2, %v4829_v11, %v2515_v30  ;;  %2858 = vmatpush.msrb.mxu2 %v5999_v55  ;;  %2982 = vmatpush.msra.mxu3 %v5999_v55 }
 0x478   : > { %v2524_v44 = vsel %vm2521_vm3, %v2523_v40, %v2519_v43  ;;  %v2714_v41 = vand.u32 4294901760, %v2713_v38 }
 0x479   : > { %v2525_v42 = vmul.f32 %v5941_v21, %v2524_v44 }
 0x47a   : > { %v4831_v45 = vpop.eup %4830  ;;  %2715 = vmatmul.f32.vlgmr.msra.gmra.mxu0 %v2714_v41  ;;  %2835 = vmatmul.f32.vlgmr.msrb.gmra.mxu1 %v2710_v28 }
 0x47b   : > { %v2527_v47 = vmul.f32 %v4831_v45, %v2480_v35  ;;  %v2840_v48 = vsel %vm1836_vm6, %v2525_v42, 0  ;;  %2911 = vmatpush.msra.mxu0 %v6003_v60  ;;  %3037 = vmatpush.msrb.mxu1 %v3036_v46  ;;  %vm2532_vm4 = vweird.f32 %v4831_v45 }
 0x47c   : > { %v2859_v49 = vand.u32 4294901760, %v2840_v48  ;;  %vm2533_vm8 = vmor %vm2531_vm7, %vm2532_vm4 }
 0x47d   : > { %v2528_v50 = vsub.f32 1.0, %v2527_v47 }
 0x47e   : > { %v2860_v52 = vsub.f32 %v2840_v48, %v2859_v49  ;;  %2765 = vmatmul.f32.vlgmr.msra.gmra.mxu2 %v2711_v32  ;;  %2890 = vmatmul.f32.vlgmr.msrb.gmra.mxu3 %v2859_v49 }
 0x47f   : > { %v2529_v53 = vmul.f32 %v4831_v45, %v2528_v50  ;;  %2960 = vmatpush.msra.mxu2 %v2885_v2  ;;  %3083 = vmatpush.msrb.mxu3 %v6012_v14 }
 0x480   : > { %v2861_v21 = vand.u32 4294901760, %v2860_v52 }
 0x481   : > { %v2530_v55 = vadd.f32 %v4831_v45, %v2529_v53 }
 0x482   : > { %v2862_v57 = vsub.f32 %v2860_v52, %v2861_v21  ;;  %2813 = vmatmul.f32.vlgmr.msrb.gmra.mxu0 %v2710_v28  ;;  %2938 = vmatmul.f32.vlgmr.msra.gmra.mxu1 %v2861_v21 }
 0x483   : > { %v2534_v58 = vsel %vm2533_vm8, %v4831_v45, %v2530_v55  ;;  %3007 = vmatpush.msrb.mxu0 %v6012_v14  ;;  %3131 = vmatpush.msra.mxu1 %v6012_v14 }
 0x484   : > { %v2539_v59 = vsel %vm2536_vm9, %v2538_v56, %v2534_v58  ;;  %v2863_v61 = vand.u32 4294901760, %v2862_v57  ;;  %vm4141_vm9 = vcmask 523264  }
 0x485   : > { %v2540_v60 = vmul.f32 %v5950_v39, %v2539_v59 }
 0x486   : > { %2864 = vmatmul.f32.vlgmr.msrb.gmra.mxu2 %v2863_v61  ;;  %2984 = vmatmul.f32.vlgmr.msra.gmra.mxu3 %v2859_v49 }
 0x487   : > { %v2989_v62 = vsel %vm1836_vm6, %v2540_v60, 0  ;;  %3060 = vmatpush.msrb.mxu2 %v6018_v24 }
 0x488   : > { %v3008_v63 = vand.u32 4294901760, %v2989_v62 }
 0x48a   : > { %v3009_v0 = vsub.f32 %v2989_v62, %v3008_v63  ;;  %2914 = vmatmul.f32.vlgmr.msra.gmra.mxu0 %v2860_v52  ;;  %3039 = vmatmul.f32.vlgmr.msrb.gmra.mxu1 %v3008_v63 }
 0x48b   : > { %3109 = vmatpush.msra.mxu0 %v3034_v33 }
 0x48c   : > { %v3010_v1 = vand.u32 4294901760, %v3009_v0 }
 0x48e   : > { %v3011_v2 = vsub.f32 %v3009_v0, %v3010_v1  ;;  %2962 = vmatmul.f32.vlgmr.msra.gmra.mxu2 %v2859_v49  ;;  %3087 = vmatmul.f32.vlgmr.msrb.gmra.mxu3 %v3010_v1 }
 0x490   : > { %v3012_v3 = vand.u32 4294901760, %v3011_v2 }
 0x492   : > { %3013 = vmatmul.f32.vlgmr.msrb.gmra.mxu0 %v3012_v3  ;;  %3133 = vmatmul.f32.vlgmr.msra.gmra.mxu1 %v3008_v63 }
 0x496   : > { %3063 = vmatmul.f32.vlgmr.msrb.gmra.mxu2 %v3009_v0 }
 0x49a   : > { %3111 = vmatmul.f32.vlgmr.msra.gmra.mxu0 %v3008_v63 }
 0x4e5   : > { %v2617_v5 = vpop.f32.mrf.mxu0 }
 0x4e7   : > { %v2641_v4 = vpop.f32.mrf.mxu1 }
 0x4e9   : > { %v2593_v39 = vpop.f32.mrf.mxu3 }
 0x4ef   : > { %v2742_v9 = vpop.f32.mrf.mxu1 }
 0x4f1   : > { %v2567_v7 = vpop.f32.mrf.mxu2  ;;  %v2687_v13 = vpop.f32.mrf.mxu3 }
 0x4f2   : > { %v2594_v20 = vadd.f32 %v2593_v39, %v2567_v7 }
 0x4f4   : > { %v2618_v25 = vadd.f32 %v2617_v5, %v2594_v20 }
 0x4f6   : > { %v2642_v29 = vadd.f32 %v2641_v4, %v2618_v25 }
 0x4f7   : > { %v2716_v10 = vpop.f32.mrf.mxu0  ;;  %v2836_v17 = vpop.f32.mrf.mxu1 }
 0x4f8   : > { %v2743_v28 = vadd.f32 %v2742_v9, %v2716_v10 }
 0x4f9   : > { %v2665_v6 = vpop.f32.mrf.mxu2  ;;  %v2790_v12 = vpop.f32.mrf.mxu3 }
 0x4fa   : > { %v2666_v34 = vadd.f32 %v2665_v6, %v2642_v29 }
 0x4fc   : > { %v2688_v37 = vadd.f32 %v2687_v13, %v2666_v34 }
 0x4fe   : > { %v3139_v42 = vrot.slane %v2688_v37, 4 }
 0x4ff   : > { %v2814_v14 = vpop.f32.mrf.mxu0  ;;  %v2939_v24 = vpop.f32.mrf.mxu1 }
 0x501   : > { %v2766_v18 = vpop.f32.mrf.mxu2  ;;  %v2891_v19 = vpop.f32.mrf.mxu3 }
 0x502   : > { %v2767_v31 = vadd.f32 %v2766_v18, %v2743_v28 }
 0x504   : > { %v2791_v36 = vadd.f32 %v2790_v12, %v2767_v31 }
 0x506   : > { %v2815_v38 = vadd.f32 %v2814_v14, %v2791_v36 }
 0x507   : > { %v2915_v22 = vpop.f32.mrf.mxu0  ;;  %v3040_v40 = vpop.f32.mrf.mxu1 }
 0x508   : > { %v2837_v48 = vadd.f32 %v2836_v17, %v2815_v38 }
 0x509   : > { %v2865_v23 = vpop.f32.mrf.mxu2  ;;  %v2985_v33 = vpop.f32.mrf.mxu3 }
 0x50a   : > { %v2892_v11 = vadd.f32 %v2891_v19, %v2865_v23  ;;  %v3151_v55 = vrot.slane %v2837_v48, 4 }
 0x50c   : > { %v2916_v27 = vadd.f32 %v2915_v22, %v2892_v11 }
 0x50e   : > { %v2940_v32 = vadd.f32 %v2939_v24, %v2916_v27 }
 0x50f   : > { %v3014_v30 = vpop.f32.mrf.mxu0  ;;  %v3134_v54 = vpop.f32.mrf.mxu1 }
 0x510   : > { %v3041_v44 = vadd.f32 %v3040_v40, %v3014_v30 }
 0x511   : > { %v2963_v15 = vpop.f32.mrf.mxu2  ;;  %v3088_v47 = vpop.f32.mrf.mxu3 }
 0x512   : > { %v2964_v35 = vadd.f32 %v2963_v15, %v2940_v32 }
 0x514   : > { %v2986_v43 = vadd.f32 %v2985_v33, %v2964_v35 }
 0x516   : > { %v3137_v45 = vrot.slane %v2986_v43, 4  ;;  %v3140_v49 = vsel %vm1486_vm5, %v2986_v43, %v3139_v42 }
 0x517   : > { %v3112_v51 = vpop.f32.mrf.mxu0  ;;  %v3148_v21 = vperm.slane %v3140_v49, %v5829_v16 }
 0x518   : > { %v3138_v52 = vsel %vm1486_vm5, %v3137_v45, %v2688_v37 }
 0x519   : > { %v3064_v41 = vpop.f32.mrf.mxu2  ;;  %v3144_v57 = vperm.slane %v3138_v52, %v5829_v16  ;;  %v3175_v61 = vrot.slane %v3148_v21, 4 }
 0x51a   : > { %v3065_v46 = vadd.f32 %v3064_v41, %v3041_v44 }
 0x51b   : > { %v3163_v63 = vrot.slane %v3144_v57, 4 }
 0x51c   : > { %v3089_v50 = vadd.f32 %v3088_v47, %v3065_v46 }
 0x51e   : > { %v3113_v53 = vadd.f32 %v3112_v51, %v3089_v50 }
 0x520   : > { %v3135_v56 = vadd.f32 %v3134_v54, %v3113_v53  ;;  %v3266_v53 = vld [vmem:[%s6312_s9 + $0x10] sm:$0xff] }
 0x522   : > { %v3149_v58 = vrot.slane %v3135_v56, 4  ;;  %v3152_v59 = vsel %vm1486_vm5, %v3135_v56, %v3151_v55  ;;  %v3265_v55 = vld [vmem:[%s6312_s9 + $0x8] sm:$0xff] }
 0x523   : > { %v3160_v60 = vperm.slane %v3152_v59, %v5829_v16  ;;  %v3264_v59 = vld [vmem:[%s6312_s9] sm:$0xff] }
 0x524   : > { %v3150_v62 = vsel %vm1486_vm5, %v3149_v58, %v2837_v48  ;;  %v3291_v58 = vand.u32 4294901760, %v3265_v55 }
 0x525   : > { %v3156_v0 = vperm.slane %v3150_v62, %v5829_v16  ;;  %v3173_v1 = vrot.slane %v3160_v60, 4  ;;  %v3176_v2 = vsel %vm1486_vm5, %v3160_v60, %v3175_v61 }
 0x526   : > { %v3184_v3 = vperm.slane %v3176_v2, %v5834_v26  ;;  %v3329_v62 = vsub.f32 %v3265_v55, %v3291_v58 }
 0x527   : > { %v3161_v39 = vrot.slane %v3156_v0, 4  ;;  %v3164_v4 = vsel %vm1486_vm5, %v3156_v0, %v3163_v63  ;;  %v3174_v5 = vsel %vm1486_vm5, %v3173_v1, %v3148_v21  ;;  %v3289_v21 = vand.u32 4294901760, %v3266_v53 }
 0x528   : > { %v3172_v7 = vperm.slane %v3164_v4, %v5834_v26  ;;  %v3180_v13 = vperm.slane %v3174_v5, %v5834_v26  ;;  %v3191_v9 = vrot.slane %v3184_v3, 4  ;;  %v3293_v63 = vand.u32 4294901760, %v3264_v59 }
 0x529   : > { %v3162_v10 = vsel %vm1486_vm5, %v3161_v39, %v3144_v57  ;;  %v3323_v57 = vsub.f32 %v3266_v53, %v3289_v21  ;;  %v3330_v2 = vand.u32 4294901760, %v3329_v62 }
 0x52a   : > { %v3168_v6 = vperm.slane %v3162_v10, %v5834_v26  ;;  %v3187_v12 = vrot.slane %v3172_v7, 4  ;;  %v3189_v14 = vrot.slane %v3180_v13, 4  ;;  %v3192_v17 = vsel %vm1486_vm5, 0.0, %v3191_v9 }
 0x52b   : > { %v3204_v18 = vsel %vm1486_vm5, %v3191_v9, %v3180_v13  ;;  %v3209_v19 = vrot.slane %v3192_v17, 4  ;;  %v3324_v60 = vand.u32 4294901760, %v3323_v57  ;;  %v3335_v3 = vsub.f32 %v3264_v59, %v3293_v63 }
 0x52c   : > { %v3185_v20 = vrot.slane %v3168_v6, 4  ;;  %v3188_v22 = vsel %vm1486_vm5, 0.0, %v3187_v12  ;;  %v3190_v23 = vsel %vm1486_vm5, 0.0, %v3189_v14  ;;  %v3193_v11 = vsel %vm1486_vm5, %v3187_v12, %v3168_v6 }
 0x52d   : > { %v3197_v24 = vperm.slane %v3193_v11, %v5829_v16  ;;  %v3198_v25 = vrot.slane %v3188_v22, 4  ;;  %v3208_v27 = vperm.slane %v3204_v18, %v5829_v16  ;;  %v3210_v28 = vsel %vm1486_vm5, %v3209_v19, %v3190_v23 }
 0x52e   : > { %v3186_v29 = vsel %vm1486_vm5, 0.0, %v3185_v20  ;;  %v3214_v31 = vperm.slane %v3210_v28, %v5829_v16  ;;  %v3325_v1 = vsub.f32 %v3323_v57, %v3324_v60  ;;  %v3331_v4 = vsub.f32 %v3329_v62, %v3330_v2 }
 0x52f   : > { %v3199_v32 = vsel %vm1486_vm5, %v3198_v25, %v3186_v29  ;;  %v3217_v33 = vrot.slane %v3197_v24, 4  ;;  %v3229_v15 = vrot.slane %v3208_v27, 4  ;;  %v3336_v5 = vand.u32 4294901760, %v3335_v3  ;;  %v4805_v25 = vld [vmem:[#allocation13] ss:$0 sm:$0xff] }
 0x530   : > { %v3203_v34 = vperm.slane %v3199_v32, %v5829_v16  ;;  %v3227_v35 = vrot.slane %v3214_v31, 4  ;;  %v3326_v39 = vand.u32 4294901760, %v3325_v1  ;;  %v3332_v7 = vand.u32 4294901760, %v3331_v4 }
 0x531   : > { %v3230_v30 = vsel %vm1486_vm5, %v3214_v31, %v3229_v15  ;;  %v3337_v13 = vsub.f32 %v3335_v3, %v3336_v5 }
 0x532   : > { %v3218_v36 = vsel %vm1486_vm5, %v3203_v34, %v3217_v33  ;;  %v3238_v40 = vperm.slane %v3230_v30, %v5834_v26  ;;  %v3215_v37 = vrot.slane %v3203_v34, 4  ;;  %v3228_v43 = vsel %vm1486_vm5, %v3227_v35, %v3208_v27 }
 0x533   : > { %v3226_v38 = vperm.slane %v3218_v36, %v5834_v26  ;;  %v3234_v44 = vperm.slane %v3228_v43, %v5834_v26  ;;  %v3338_v9 = vand.u32 4294901760, %v3337_v13 }
 0x534   : > { %v3243_v41 = vrot.slane %v3238_v40, 4  ;;  %v3216_v42 = vsel %vm1486_vm5, %v3215_v37, %v3197_v24  ;;  %v4842_v37 = vld [vmem:[%s5623_s12] sm:$0xff] }
 0x535   : > { %v3245_v45 = vrot.slane %v3226_v38, 4  ;;  %v3222_v16 = vperm.slane %v3216_v42, %v5834_v26  ;;  %v3239_v46 = vrot.slane %v3234_v44, 4  ;;  %v3267_v26 = vld [vmem:[%s6312_s9 + $0x18] sm:$0xff] }
 0x536   : > { %v3244_v47 = vsel %vm1486_vm5, %v3243_v41, %v3226_v38  ;;  %v3287_v52 = vand.u32 4294901760, %v3267_v26 }
 0x537   : > { %3252 = vrot.lane.b32.xlu2 %v3244_v47, %s5345_s5  ;;  %v3246_v48 = vsel %vm1486_vm5, %v3238_v40, %v3245_v45  ;;  %v3241_v49 = vrot.slane %v3222_v16, 4  ;;  %v3240_v50 = vsel %vm1486_vm5, %v3239_v46, %v3222_v16 }
 0x538   : > { %3256 = vrot.lane.b32.xlu0 %v3246_v48, %s5346_s3  ;;  %v3317_v54 = vsub.f32 %v3267_v26, %v3287_v52  ;;  %3388 = vmatpush.msrb.mxu1 %v3287_v52  ;;  %s6367_s3 = sld [smem:[#allocation43_spill]] }
 0x539   : > { %v3242_v51 = vsel %vm1486_vm5, %v3234_v44, %v3241_v49  ;;  %3288 = vmatpush.msra.mxu2 %v3287_v52  ;;  %vm3260_vm5 = vcmask 130048  }
 0x53a   : > { %3248 = vrot.lane.b32.xlu1 %v3242_v51, %s5347_s19  ;;  %v3318_v56 = vand.u32 4294901760, %v3317_v54  ;;  %3359 = vmatpush.msrb.mxu0 %v3317_v54  ;;  %s6369_s19 = sld [smem:[#allocation46_spill]] }
 0x53b   : > { %3390 = vmatpush.msrb.mxu1 %v3289_v21  ;;  %3290 = vmatpush.msra.mxu2 %v3289_v21 }
 0x53c   : > { %v3319_v61 = vsub.f32 %v3317_v54, %v3318_v56  ;;  %3362 = vmatpush.msrb.mxu0 %v3323_v57 }
 0x53d   : > { %3392 = vmatpush.msrb.mxu1 %v3291_v58  ;;  %3292 = vmatpush.msra.mxu2 %v3291_v58 }
 0x53e   : > { %v3320_v0 = vand.u32 4294901760, %v3319_v61  ;;  %3365 = vmatpush.msrb.mxu0 %v3329_v62  ;;  %v3496_v46 = vld [vmem:[%s6367_s3 + $0x18] sm:$0xff]  ;;  %v3495_v48 = vld [vmem:[%s6367_s3 + $0x10] sm:$0xff]  ;;  %v3494_v51 = vld [vmem:[%s6367_s3 + $0x8] sm:$0xff] }
 0x53f   : > { %3394 = vmatpush.msrb.mxu1 %v3293_v63  ;;  %3294 = vmatpush.msra.mxu2 %v3293_v63  ;;  %v3516_v47 = vand.u32 4294901760, %v3496_v46  ;;  %v3520_v53 = vand.u32 4294901760, %v3494_v51  ;;  %v3493_v54 = vld [vmem:[%s6367_s3] sm:$0xff] }
 0x540   : > { %3321 = vmatpush.msra.mxu3 %v3320_v0  ;;  %3368 = vmatpush.msrb.mxu0 %v3335_v3 }
 0x541   : > { %3417 = vmatpush.msrb.mxu2 %v3318_v56  ;;  %v3546_v49 = vsub.f32 %v3496_v46, %v3516_v47  ;;  %v3558_v57 = vsub.f32 %v3494_v51, %v3520_v53 }
 0x542   : > { %3327 = vmatpush.msra.mxu3 %v3326_v39  ;;  %3517 = vmatpush.msra.mxu0 %v3516_v47 }
 0x543   : > { %3421 = vmatpush.msrb.mxu2 %v3324_v60  ;;  %v3547_v26 = vand.u32 4294901760, %v3546_v49  ;;  %v3559_v60 = vand.u32 4294901760, %v3558_v57 }
 0x544   : > { %3333 = vmatpush.msra.mxu3 %v3332_v7 }
 0x545   : > { %3425 = vmatpush.msrb.mxu2 %v3330_v2  ;;  %v3548_v55 = vsub.f32 %v3546_v49, %v3547_v26  ;;  %v3560_v0 = vsub.f32 %v3558_v57, %v3559_v60 }
 0x546   : > { %3339 = vmatpush.msra.mxu3 %v3338_v9 }
 0x547   : > { %3429 = vmatpush.msrb.mxu2 %v3336_v5  ;;  %v3549_v59 = vand.u32 4294901760, %v3548_v55  ;;  %v3561_v39 = vand.u32 4294901760, %v3560_v0 }
 0x548   : > { %3448 = vmatpush.msrb.mxu3 %v3287_v52 }
 0x549   : > { %3550 = vmatpush.msra.mxu1 %v3549_v59 }
 0x54a   : > { %3450 = vmatpush.msrb.mxu3 %v3289_v21  ;;  %v3522_v21 = vand.u32 4294901760, %v3493_v54 }
 0x54c   : > { %3452 = vmatpush.msrb.mxu3 %v3291_v58  ;;  %v3564_v58 = vsub.f32 %v3493_v54, %v3522_v21 }
 0x54e   : > { %3454 = vmatpush.msrb.mxu3 %v3293_v63  ;;  %v3565_v62 = vand.u32 4294901760, %v3564_v58 }
 0x550   : > { %v3566_v2 = vsub.f32 %v3564_v58, %v3565_v62 }
 0x552   : > { %v3567_v4 = vand.u32 4294901760, %v3566_v2 }
 0x591   : > { %v3253_v6 = vpop.permute.xlu2 %3252 }
 0x5aa   : > { %v3257_v14 = vpop.permute.xlu0 %3256 }
 0x5ac   : > { %v3249_v10 = vpop.permute.xlu1 %3248 }
 0x5ad   : > { %v3259_v12 = vsel %vm1836_vm6, %v3240_v50, %v3249_v10  ;;  %v3518_v50 = vand.u32 4294901760, %v3495_v48 }
 0x5ae   : > { %v3261_v17 = vsel %vm3260_vm5, %v3259_v12, %v3253_v6  ;;  %v4806_v12 = vld [vmem:[#allocation14] ss:$0 sm:$0xff] }
 0x5af   : > { %v3263_v18 = vsel %vm3262_vm10, %v3261_v17, %v3257_v14  ;;  %v3552_v52 = vsub.f32 %v3495_v48, %v3518_v50  ;;  %3519 = vmatpush.msra.mxu0 %v3518_v50 }
 0x5b0   : > { %v3273_v19 = vsel %vm855_vm0, %v3263_v18, 0  ;;  %v4807_v18 = vld [vmem:[#allocation16] ss:$0 sm:$0xff] }
 0x5b1   : > { %v3295_v20 = vand.u32 4294901760, %v3273_v19  ;;  %v3553_v56 = vand.u32 4294901760, %v3552_v52  ;;  %3521 = vmatpush.msra.mxu0 %v3520_v53 }
 0x5b3   : > { %3341 = vmatmul.f32.vlgmr.msra.gmra.mxu3 %v3295_v20  ;;  %v3296_v22 = vsub.f32 %v3273_v19, %v3295_v20  ;;  %v3554_v61 = vsub.f32 %v3552_v52, %v3553_v56  ;;  %3523 = vmatpush.msra.mxu0 %v3522_v21 }
 0x5b4   : > { %3617 = vmatpush.msra.mxu3 %v3516_v47 }
 0x5b5   : > { %3371 = vmatmul.f32.vlgmr.msrb.gmra.mxu0 %v3296_v22  ;;  %v3297_v23 = vand.u32 4294901760, %v3296_v22  ;;  %v3555_v63 = vand.u32 4294901760, %v3554_v61 }
 0x5b6   : > { %3619 = vmatpush.msra.mxu3 %v3518_v50  ;;  %3646 = vmatpush.msrb.mxu0 %v3547_v26 }
 0x5b7   : > { %3398 = vmatmul.f32.vlgmr.msrb.gmra.mxu1 %v3297_v23  ;;  %v3298_v11 = vsub.f32 %v3296_v22, %v3297_v23 }
 0x5b8   : > { %3621 = vmatpush.msra.mxu3 %v3520_v53  ;;  %3556 = vmatpush.msra.mxu1 %v3555_v63 }
 0x5b9   : > { %v3299_v24 = vand.u32 4294901760, %v3298_v11  ;;  %3650 = vmatpush.msrb.mxu0 %v3553_v56 }
 0x5ba   : > { %3623 = vmatpush.msra.mxu3 %v3522_v21  ;;  %3562 = vmatpush.msra.mxu1 %v3561_v39 }
 0x5bb   : > { %3300 = vmatmul.f32.vlgmr.msra.gmra.mxu2 %v3299_v24  ;;  %3456 = vmatmul.f32.vlgmr.msrb.gmra.mxu3 %v3295_v20 }
 0x5bc   : > { %3588 = vmatpush.msra.mxu2 %v3546_v49  ;;  %3654 = vmatpush.msrb.mxu0 %v3559_v60  ;;  %v3713_v49 = vld [vmem:[#allocation19] sm:$0xff] }
 0x5bd   : > { %3568 = vmatpush.msra.mxu1 %v3567_v4  ;;  %v3738_v51 = vand.u32 4294901760, %v3713_v49 }
 0x5be   : > { %3591 = vmatpush.msra.mxu2 %v3552_v52  ;;  %3658 = vmatpush.msrb.mxu0 %v3565_v62 }
 0x5bf   : > { %3677 = vmatpush.msrb.mxu1 %v3516_v47  ;;  %v3714_v47 = vld [vmem:[#allocation19 + $0x8] sm:$0xff]  ;;  %v3770_v52 = vsub.f32 %v3713_v49, %v3738_v51 }
 0x5c0   : > { %3594 = vmatpush.msra.mxu2 %v3558_v57  ;;  %v3736_v48 = vand.u32 4294901760, %v3714_v47 }
 0x5c1   : > { %3679 = vmatpush.msrb.mxu1 %v3518_v50  ;;  %v3771_v54 = vand.u32 4294901760, %v3770_v52 }
 0x5c2   : > { %3597 = vmatpush.msra.mxu2 %v3564_v58  ;;  %v3764_v50 = vsub.f32 %v3714_v47, %v3736_v48 }
 0x5c3   : > { %3431 = vmatmul.f32.vlgmr.msrb.gmra.mxu2 %v3295_v20  ;;  %3681 = vmatpush.msrb.mxu1 %v3520_v53  ;;  %v3772_v55 = vsub.f32 %v3770_v52, %v3771_v54 }
 0x5c4   : > { %3737 = vmatpush.msrb.mxu2 %v3736_v48  ;;  %v3765_v26 = vand.u32 4294901760, %v3764_v50 }
 0x5c5   : > { %3683 = vmatpush.msrb.mxu1 %v3522_v21  ;;  %v3773_v56 = vand.u32 4294901760, %v3772_v55 }
 0x5c6   : > { %3739 = vmatpush.msrb.mxu2 %v3738_v51  ;;  %v3766_v53 = vsub.f32 %v3764_v50, %v3765_v26 }
 0x5c8   : > { %v3767_v21 = vand.u32 4294901760, %v3766_v53 }
 0x5ca   : > { %3768 = vmatpush.msrb.mxu3 %v3767_v21 }
 0x5cc   : > { %3774 = vmatpush.msrb.mxu3 %v3773_v56 }
 0x632   : > { %v3372_v32 = vpop.f32.mrf.mxu0 }
 0x634   : > { %v3399_v15 = vpop.f32.mrf.mxu1 }
 0x636   : > { %v3342_v27 = vpop.f32.mrf.mxu3 }
 0x63e   : > { %v3301_v28 = vpop.f32.mrf.mxu2  ;;  %v3457_v36 = vpop.f32.mrf.mxu3 }
 0x63f   : > { %v3302_v29 = vadd.f32 %v4805_v25, %v3301_v28  ;;  %v4808_v28 = vld [vmem:[#allocation17] ss:$0 sm:$0xff] }
 0x641   : > { %v3343_v31 = vadd.f32 %v3342_v27, %v3302_v29 }
 0x643   : > { %v3373_v33 = vadd.f32 %v3372_v32, %v3343_v31 }
 0x645   : > { %v3400_v34 = vadd.f32 %v3399_v15, %v3373_v33 }
 0x646   : > { %v3432_v35 = vpop.f32.mrf.mxu2 }
 0x647   : > { %v3433_v30 = vadd.f32 %v3432_v35, %v3400_v34 }
 0x649   : > { %v3458_v40 = vadd.f32 %v3457_v36, %v3433_v30 }
 0x64b   : > { %v6098_v43 = vadd.f32 %v4842_v37, %v3458_v40 }
 0x64d   : > { %v3463_v38 = vsel %vm855_vm0, %v6098_v43, 0.0 }
 0x64e   : > { %3464 = vadd.xlane.f32.xlu1 %v3463_v38 }
 0x6c1   : > { %v3465_v44 = vpop.xlane.xlu1 %3464 }
 0x6c2   : > { %v3466_v41 = vmul.f32 %v3465_v44, %v5655_v8 }
 0x6c4   : > { %v6104_v42 = vsub.f32 %v6098_v43, %v3466_v41 }
 0x6c6   : > { %v3468_v45 = vmul.f32 %v6104_v42, %v6104_v42 }
 0x6c8   : > { %v3469_v16 = vsel %vm855_vm0, %v3468_v45, 0.0 }
 0x6c9   : > { %3470 = vadd.xlane.f32.xlu0 %v3469_v16 }
 0x73c   : > { %v3471_v1 = vpop.xlane.xlu0 %3470 }
 0x73d   : > { %v3472_v3 = vmul.f32 %v3471_v1, %v5655_v8 }
 0x73f   : > { %v3473_v5 = vadd.f32 1e-05, %v3472_v3 }
 0x741   : > { %4832 = vrsqrt.f32 %v3473_v5  ;;  %vm3480_vm11 = vweird.f32 %v3473_v5 }
 0x747   : > { %v4833_v7 = vpop.eup %4832 }
 0x748   : > { %v3475_v13 = vmul.f32 %v4833_v7, %v3473_v5  ;;  %vm3481_vm6 = vweird.f32 %v4833_v7 }
 0x749   : > { %vm3482_vm12 = vmor %vm3480_vm11, %vm3481_vm6 }
 0x74a   : > { %v3476_v9 = vmul.f32 %v4833_v7, %v3475_v13 }
 0x74c   : > { %v3477_v10 = vmul.f32 0.5, %v3476_v9 }
 0x74e   : > { %v3478_v6 = vsub.f32 1.5, %v3477_v10 }
 0x750   : > { %v3479_v8 = vmul.f32 %v4833_v7, %v3478_v6  ;;  %v3885_v6 = vld [vmem:[#allocation22 + $0x18] sm:$0xff] }
 0x752   : > { %v3483_v14 = vsel %vm3482_vm12, %v4833_v7, %v3479_v8  ;;  %v3905_v8 = vand.u32 4294901760, %v3885_v6 }
 0x753   : > { %v3484_v17 = vmul.f32 %v3483_v14, %v6104_v42 }
 0x754   : > { %v3935_v14 = vsub.f32 %v3885_v6, %v3905_v8 }
 0x755   : > { %v3488_v19 = vmul.f32 %v4806_v12, %v3484_v17  ;;  %v3884_v12 = vld [vmem:[#allocation22 + $0x10] sm:$0xff] }
 0x756   : > { %v3907_v17 = vand.u32 4294901760, %v3884_v12 }
 0x757   : > { %v6123_v20 = vadd.f32 %v4807_v18, %v3488_v19  ;;  %v3883_v18 = vld [vmem:[#allocation22 + $0x8] sm:$0xff]  ;;  %v3936_v19 = vand.u32 4294901760, %v3935_v14 }
 0x759   : > { %v3502_v22 = vsel %vm855_vm0, %v6123_v20, 0 }
 0x75a   : > { %v3524_v23 = vand.u32 4294901760, %v3502_v22 }
 0x75c   : > { %3570 = vmatmul.f32.vlgmr.msra.gmra.mxu1 %v3524_v23  ;;  %v3525_v11 = vsub.f32 %v3502_v22, %v3524_v23  ;;  %v3941_v22 = vsub.f32 %v3884_v12, %v3907_v17  ;;  %v4135_v12 = vld [vmem:[%s6369_s19 + $0x30] sm:$0xff] }
 0x75d   : > { %3821 = vmatpush.msra.mxu1 %v3736_v48 }
 0x75e   : > { %3600 = vmatmul.f32.vlgmr.msra.gmra.mxu2 %v3525_v11  ;;  %v3526_v24 = vand.u32 4294901760, %v3525_v11 }
 0x75f   : > { %3823 = vmatpush.msra.mxu1 %v3738_v51  ;;  %3848 = vmatpush.msra.mxu2 %v3765_v26 }
 0x760   : > { %3627 = vmatmul.f32.vlgmr.msra.gmra.mxu3 %v3526_v24  ;;  %v3527_v25 = vsub.f32 %v3525_v11, %v3526_v24  ;;  %v3882_v11 = vld [vmem:[#allocation22] sm:$0xff]  ;;  %v3937_v24 = vsub.f32 %v3935_v14, %v3936_v19 }
 0x761   : > { %3852 = vmatpush.msra.mxu2 %v3771_v54  ;;  %3873 = vmatpush.msra.mxu3 %v3736_v48 }
 0x762   : > { %v3528_v27 = vand.u32 4294901760, %v3527_v25  ;;  %v3942_v25 = vand.u32 4294901760, %v3941_v22 }
 0x763   : > { %3875 = vmatpush.msra.mxu3 %v3738_v51 }
 0x764   : > { %3529 = vmatmul.f32.vlgmr.msra.gmra.mxu0 %v3528_v27  ;;  %3685 = vmatmul.f32.vlgmr.msrb.gmra.mxu1 %v3524_v23 }
 0x765   : > { %3796 = vmatpush.msra.mxu0 %v3764_v50 }
 0x767   : > { %3799 = vmatpush.msra.mxu0 %v3770_v52 }
 0x76c   : > { %3660 = vmatmul.f32.vlgmr.msrb.gmra.mxu0 %v3524_v23  ;;  %v3909_v23 = vand.u32 4294901760, %v3883_v18 }
 0x76d   : > { %3906 = vmatpush.msrb.mxu0 %v3905_v8 }
 0x76e   : > { %v3947_v27 = vsub.f32 %v3883_v18, %v3909_v23  ;;  %v6148_v18 = vand.u32 4294901760, %v4135_v12 }
 0x76f   : > { %3908 = vmatpush.msrb.mxu0 %v3907_v17 }
 0x771   : > { %3910 = vmatpush.msrb.mxu0 %v3909_v23 }
 0x7d9   : > { %v3571_v29 = vpop.f32.mrf.mxu1 }
 0x7e1   : > { %v3530_v31 = vpop.f32.mrf.mxu0  ;;  %v3601_v15 = vpop.f32.mrf.mxu2 }
 0x7e2   : > { %v3531_v32 = vadd.f32 %v4808_v28, %v3530_v31  ;;  %v3686_v37 = vpop.f32.mrf.mxu1  ;;  %v3911_v28 = vand.u32 4294901760, %v3882_v11  ;;  %v3943_v31 = vsub.f32 %v3941_v22, %v3942_v25 }
 0x7e3   : > { %v3628_v35 = vpop.f32.mrf.mxu3 }
 0x7e4   : > { %v3572_v33 = vadd.f32 %v3571_v29, %v3531_v32  ;;  %v3938_v29 = vand.u32 4294901760, %v3937_v24  ;;  %v3948_v32 = vand.u32 4294901760, %v3947_v27  ;;  %3912 = vmatpush.msrb.mxu0 %v3911_v28 }
 0x7e6   : > { %v3602_v34 = vadd.f32 %v3601_v15, %v3572_v33  ;;  %v3953_v33 = vsub.f32 %v3882_v11, %v3911_v28  ;;  %3939 = vmatpush.msrb.mxu1 %v3938_v29  ;;  %v3944_v15 = vand.u32 4294901760, %v3943_v31  ;;  %v6160_v11 = vsub.f32 %v4135_v12, %v6148_v18 }
 0x7e8   : > { %v3629_v30 = vadd.f32 %v3628_v35, %v3602_v34  ;;  %v3949_v34 = vsub.f32 %v3947_v27, %v3948_v32  ;;  %v3954_v35 = vand.u32 4294901760, %v3953_v33  ;;  %3945 = vmatpush.msrb.mxu1 %v3944_v15  ;;  %v4194_v29 = vand.u32 4294901760, %v6160_v11 }
 0x7e9   : > { %v3661_v36 = vpop.f32.mrf.mxu0 }
 0x7ea   : > { %v3662_v40 = vadd.f32 %v3661_v36, %v3629_v30  ;;  %v3950_v30 = vand.u32 4294901760, %v3949_v34  ;;  %v3955_v36 = vsub.f32 %v3953_v33, %v3954_v35 }
 0x7ec   : > { %v3687_v38 = vadd.f32 %v3686_v37, %v3662_v40  ;;  %3951 = vmatpush.msrb.mxu1 %v3950_v30  ;;  %v3956_v40 = vand.u32 4294901760, %v3955_v36  ;;  %v4809_v37 = vld [vmem:[#allocation20] ss:$0 sm:$0xff] }
 0x7ee   : > { %v3689_v44 = vsel %vm3260_vm5, %v3687_v38, -inf  ;;  %3957 = vmatpush.msrb.mxu1 %v3956_v40 }
 0x7ef   : > { %3690 = vmax.xlane.f32.xlu2 %v3689_v44 }
 0x862   : > { %v3691_v41 = vpop.xlane.xlu2 %3690 }
 0x863   : > { %v3692_v42 = vsub.f32 %v3687_v38, %v3691_v41 }
 0x865   : > { %v3693_v45 = vmul.f32 1.442695, %v3692_v42 }
 0x867   : > { %4834 = vpow2.f32 %v3693_v45 }
 0x86d   : > { %v4835_v16 = vpop.eup %4834 }
 0x86e   : > { %v3695_v46 = vsel %vm3260_vm5, %v4835_v16, 0.0 }
 0x86f   : > { %3696 = vadd.xlane.f32.xlu1 %v3695_v46 }
 0x8e2   : > { %v3697_v57 = vpop.xlane.xlu1 %3696 }
 0x8e3   : > { %4836 = vrcp.f32 %v3697_v57  ;;  %v3709_v60 = vand.u32 2147483648, %v3697_v57  ;;  %v3707_v63 = vand.u32 2147483647, %v3697_v57  ;;  %vm3703_vm14 = vweird.f32 %v3697_v57 }
 0x8e5   : > { %v3710_v1 = vor.u32 1.1754944e-38, %v3709_v60  ;;  %vm3708_vm1 = vcmp.eq.f32.partialorder %v3707_v63, 8.507059e+37 }
 0x8e9   : > { %v4837_v58 = vpop.eup %4836 }
 0x8ea   : > { %v3699_v59 = vmul.f32 %v4837_v58, %v3697_v57  ;;  %vm3704_vm13 = vweird.f32 %v4837_v58  ;;  %v5348_v57 = vmov 1.4142135  }
 0x8eb   : > { %vm3705_vm15 = vmor %vm3703_vm14, %vm3704_vm13  ;;  %4838 = vrcp.f32 %v5348_v57 }
 0x8ec   : > { %v3700_v61 = vsub.f32 1.0, %v3699_v59 }
 0x8ee   : > { %v3701_v62 = vmul.f32 %v4837_v58, %v3700_v61 }
 0x8f0   : > { %v3702_v0 = vadd.f32 %v4837_v58, %v3701_v62 }
 0x8f2   : > { %v3706_v2 = vsel %vm3705_vm15, %v4837_v58, %v3702_v0  ;;  %v4839_v58 = vpop.eup %4838 }
 0x8f3   : > { %v3711_v3 = vsel %vm3708_vm1, %v3710_v1, %v3706_v2  ;;  %v4080_v59 = vmul.f32 1.4142135, %v4839_v58  ;;  %vm4084_vm2 = vweird.f32 %v4839_v58 }
 0x8f4   : > { %v3712_v39 = vmul.f32 %v4835_v16, %v3711_v3 }
 0x8f5   : > { %v4081_v61 = vsub.f32 1.0, %v4080_v59 }
 0x8f6   : > { %v3720_v4 = vsel %vm3260_vm5, %v3712_v39, 0 }
 0x8f7   : > { %v3740_v5 = vand.u32 4294901760, %v3720_v4  ;;  %v4082_v0 = vmul.f32 %v4839_v58, %v4081_v61 }
 0x8f9   : > { %3776 = vmatmul.f32.vlgmr.msrb.gmra.mxu3 %v3740_v5  ;;  %v3741_v7 = vsub.f32 %v3720_v4, %v3740_v5  ;;  %v4083_v4 = vadd.f32 %v4839_v58, %v4082_v0 }
 0x8fa   : > { %4006 = vmatpush.msrb.mxu3 %v3905_v8 }
 0x8fb   : > { %3802 = vmatmul.f32.vlgmr.msra.gmra.mxu0 %v3741_v7  ;;  %v3742_v13 = vand.u32 4294901760, %v3741_v7 }
 0x8fc   : > { %4008 = vmatpush.msrb.mxu3 %v3907_v17  ;;  %4035 = vmatpush.msra.mxu0 %v3936_v19  ;;  %v4134_v19 = vld [vmem:[%s6369_s19 + $0x28] sm:$0xff] }
 0x8fd   : > { %3827 = vmatmul.f32.vlgmr.msra.gmra.mxu1 %v3742_v13  ;;  %v3743_v9 = vsub.f32 %v3741_v7, %v3742_v13  ;;  %v4136_v13 = vld [vmem:[%s6369_s19 + $0x38] sm:$0xff]  ;;  %v6164_v24 = vand.u32 4294901760, %v4134_v19 }
 0x8fe   : > { %4010 = vmatpush.msrb.mxu3 %v3909_v23  ;;  %4039 = vmatpush.msra.mxu0 %v3942_v25  ;;  %v4133_v25 = vld [vmem:[%s6369_s19 + $0x20] sm:$0xff] }
 0x8ff   : > { %v3744_v10 = vand.u32 4294901760, %v3743_v9  ;;  %4066 = vmatpush.msra.mxu1 %v3905_v8  ;;  %v4085_v8 = vsel %vm4084_vm2, %v4839_v58, %v4083_v4  ;;  %v6176_v31 = vand.u32 4294901760, %v4133_v25 }
 0x900   : > { %4012 = vmatpush.msrb.mxu3 %v3911_v28  ;;  %4043 = vmatpush.msra.mxu0 %v3948_v32  ;;  %v6180_v32 = vsub.f32 %v4134_v19, %v6164_v24 }
 0x901   : > { %3745 = vmatmul.f32.vlgmr.msrb.gmra.mxu2 %v3744_v10  ;;  %3877 = vmatmul.f32.vlgmr.msra.gmra.mxu3 %v3740_v5  ;;  %v6138_v10 = vand.u32 4294901760, %v4136_v13  ;;  %v6193_v30 = vsub.f32 %v4133_v25, %v6176_v31 }
 0x902   : > { %3977 = vmatpush.msrb.mxu2 %v3935_v14  ;;  %4047 = vmatpush.msra.mxu0 %v3954_v35  ;;  %v4195_v35 = vsub.f32 %v6160_v11, %v4194_v29  ;;  %v4200_v36 = vand.u32 4294901760, %v6180_v32 }
 0x903   : > { %4068 = vmatpush.msra.mxu1 %v3907_v17  ;;  %v6146_v17 = vsub.f32 %v4136_v13, %v6138_v10 }
 0x904   : > { %3980 = vmatpush.msrb.mxu2 %v3941_v22 }
 0x905   : > { %4070 = vmatpush.msra.mxu1 %v3909_v23  ;;  %v4188_v23 = vand.u32 4294901760, %v6146_v17 }
 0x906   : > { %3983 = vmatpush.msrb.mxu2 %v3947_v27 }
 0x907   : > { %4072 = vmatpush.msra.mxu1 %v3911_v28  ;;  %v4189_v28 = vsub.f32 %v6146_v17, %v4188_v23 }
 0x908   : > { %3986 = vmatpush.msrb.mxu2 %v3953_v33  ;;  %v4132_v33 = vld [vmem:[%s6369_s19 + $0x18] sm:$0xff] }
 0x909   : > { %3854 = vmatmul.f32.vlgmr.msra.gmra.mxu2 %v3740_v5  ;;  %v4190_v34 = vand.u32 4294901760, %v4189_v28  ;;  %v6196_v40 = vand.u32 4294901760, %v4132_v33 }
 0x90a   : > { %4154 = vmatpush.msra.mxu2 %v6138_v10 }
 0x90b   : > { %4191 = vmatpush.msra.mxu3 %v4190_v34 }
 0x90c   : > { %4156 = vmatpush.msra.mxu2 %v6148_v18 }
 0x90e   : > { %4158 = vmatpush.msra.mxu2 %v6164_v24 }
 0x910   : > { %4160 = vmatpush.msra.mxu2 %v6176_v31 }
 0x912   : > { %4162 = vmatpush.msra.mxu2 %v6196_v40 }
 0x978   : > { %v3803_v45 = vpop.f32.mrf.mxu0 }
 0x97a   : > { %v3828_v46 = vpop.f32.mrf.mxu1 }
 0x97c   : > { %v3777_v38 = vpop.f32.mrf.mxu3 }
 0x984   : > { %v3746_v44 = vpop.f32.mrf.mxu2  ;;  %v3878_v50 = vpop.f32.mrf.mxu3 }
 0x985   : > { %v3747_v41 = vadd.f32 %v4809_v37, %v3746_v44  ;;  %v4131_v37 = vld [vmem:[%s6369_s19 + $0x10] sm:$0xff] }
 0x987   : > { %v3778_v42 = vadd.f32 %v3777_v38, %v3747_v41  ;;  %v4196_v41 = vand.u32 4294901760, %v4195_v35 }
 0x989   : > { %v3804_v16 = vadd.f32 %v3803_v45, %v3778_v42  ;;  %v4206_v42 = vand.u32 4294901760, %v6193_v30  ;;  %v4201_v45 = vsub.f32 %v6180_v32, %v4200_v36  ;;  %4197 = vmatpush.msra.mxu3 %v4196_v41 }
 0x98b   : > { %v3829_v47 = vadd.f32 %v3828_v46, %v3804_v16  ;;  %v6211_v16 = vsub.f32 %v4132_v33, %v6196_v40  ;;  %v6213_v46 = vand.u32 4294901760, %v4131_v37 }
 0x98c   : > { %v3855_v48 = vpop.f32.mrf.mxu2 }
 0x98d   : > { %v3856_v49 = vadd.f32 %v3855_v48, %v3829_v47  ;;  %v4130_v47 = vld [vmem:[%s6369_s19 + $0x8] sm:$0xff]  ;;  %4164 = vmatpush.msra.mxu2 %v6213_v46 }
 0x98f   : > { %v3879_v51 = vadd.f32 %v3878_v50, %v3856_v49  ;;  %v4207_v50 = vsub.f32 %v6193_v30, %v4206_v42 }
 0x991   : > { %v3881_v26 = vadd.f32 %v3879_v51, %v6123_v20  ;;  %v4810_v20 = vld [vmem:[%s6368_s28] ss:$0 sm:$0xff]  ;;  %v6223_v51 = vand.u32 4294901760, %v4130_v47  ;;  %s4618_s28 = sshll.u32 %s5483_s4, 3  ;;  %s4385_s4 = scalar_lea.sflag [#allocation4], %s5617_s23 }
 0x992   : > { %s4395_s29 = scalar_lea.hbm %s6371_s24, %s4618_s28 }
 0x993   : > { %v3891_v52 = vsel %vm855_vm0, %v3881_v26, 0  ;;  %v4202_v26 = vand.u32 4294901760, %v4201_v45  ;;  %v4223_v57 = vsub.f32 %v4130_v47, %v6223_v51  ;;  %4166 = vmatpush.msra.mxu2 %v6223_v51  ;;  %s4399_s10 = sshll.u32 %s4395_s29, 4  ;;  %s4400_s10 = int_to_ptr.hbm [resolvable:$true] %s4399_s10 }
 0x994   : > { %v3913_v53 = vand.u32 4294901760, %v3891_v52  ;;  %s5247_s14 = sshra.s32 %s4400_s10, 4  ;;  %s5248_s14 = int_to_ptr.hbm [resolvable:$true] %s5247_s14 }
 0x995   : > { %4203 = vmatpush.msra.mxu3 %v4202_v26  ;;  %p5254_p12 = scmp.lt.s32.totalorder %s5248_s14, %s6371_s24 }
 0x996   : > { %3959 = vmatmul.f32.vlgmr.msrb.gmra.mxu1 %v3913_v53  ;;  %v3914_v54 = vsub.f32 %v3891_v52, %v3913_v53  ;;  %v4212_v52 = vand.u32 4294901760, %v6211_v16 }
 0x997   : > { %4286 = vmatpush.msrb.mxu1 %v6138_v10 }
 0x998   : > { %3989 = vmatmul.f32.vlgmr.msrb.gmra.mxu2 %v3914_v54  ;;  %v3915_v21 = vand.u32 4294901760, %v3914_v54  ;;  %v4213_v58 = vsub.f32 %v6211_v16, %v4212_v52 }
 0x999   : > { %4288 = vmatpush.msrb.mxu1 %v6148_v18 }
 0x99a   : > { %4016 = vmatmul.f32.vlgmr.msrb.gmra.mxu3 %v3915_v21  ;;  %v3916_v55 = vsub.f32 %v3914_v54, %v3915_v21  ;;  %v4129_v54 = vld [vmem:[%s6369_s19] sm:$0xff] }
 0x99b   : > { %4290 = vmatpush.msrb.mxu1 %v6164_v24 }
 0x99c   : > { %v3917_v56 = vand.u32 4294901760, %v3916_v55 }
 0x99d   : > { %4292 = vmatpush.msrb.mxu1 %v6176_v31 }
 0x99e   : > { %3918 = vmatmul.f32.vlgmr.msrb.gmra.mxu0 %v3917_v56  ;;  %4074 = vmatmul.f32.vlgmr.msra.gmra.mxu1 %v3913_v53  ;;  %v4208_v56 = vand.u32 4294901760, %v4207_v50 }
 0x99f   : > { %4249 = vmatpush.msrb.mxu0 %v6146_v17  ;;  %4294 = vmatpush.msrb.mxu1 %v6196_v40 }
 0x9a0   : > { %4209 = vmatpush.msra.mxu3 %v4208_v56 }
 0x9a1   : > { %4252 = vmatpush.msrb.mxu0 %v6160_v11  ;;  %4296 = vmatpush.msrb.mxu1 %v6213_v46 }
 0x9a3   : > { %4255 = vmatpush.msrb.mxu0 %v6180_v32  ;;  %4298 = vmatpush.msrb.mxu1 %v6223_v51 }
 0x9a5   : > { %4258 = vmatpush.msrb.mxu0 %v6193_v30 }
 0x9a6   : > { %4049 = vmatmul.f32.vlgmr.msra.gmra.mxu0 %v3913_v53  ;;  %v4217_v53 = vsub.f32 %v4131_v37, %v6213_v46 }
 0x9a7   : > { %4261 = vmatpush.msrb.mxu0 %v6211_v16 }
 0x9a8   : > { %v4218_v59 = vand.u32 4294901760, %v4217_v53 }
 0x9a9   : > { %4264 = vmatpush.msrb.mxu0 %v4217_v53 }
 0x9aa   : > { %v4219_v0 = vsub.f32 %v4217_v53, %v4218_v59 }
 0x9ab   : > { %4267 = vmatpush.msrb.mxu0 %v4223_v57 }
 0xa13   : > { %v3960_v60 = vpop.f32.mrf.mxu1 }
 0xa1b   : > { %v3919_v62 = vpop.f32.mrf.mxu0  ;;  %v3990_v2 = vpop.f32.mrf.mxu2 }
 0xa1c   : > { %v3920_v63 = vadd.f32 %v4810_v20, %v3919_v62  ;;  %v4075_v6 = vpop.f32.mrf.mxu1  ;;  %v4167_v20 = vand.u32 4294901760, %v4129_v54 }
 0xa1d   : > { %v4017_v39 = vpop.f32.mrf.mxu3 }
 0xa1e   : > { %v3961_v1 = vadd.f32 %v3960_v60, %v3920_v63  ;;  %v4224_v60 = vand.u32 4294901760, %v4223_v57  ;;  %v4214_v63 = vand.u32 4294901760, %v4213_v58  ;;  %4168 = vmatpush.msra.mxu2 %v4167_v20  ;;  %4300 = vmatpush.msrb.mxu1 %v4167_v20 }
 0xa20   : > { %v3991_v3 = vadd.f32 %v3990_v2, %v3961_v1  ;;  %v4229_v1 = vsub.f32 %v4129_v54, %v4167_v20  ;;  %4215 = vmatpush.msra.mxu3 %v4214_v63  ;;  %4319 = vmatpush.msrb.mxu2 %v4188_v23 }
 0xa22   : > { %v4018_v5 = vadd.f32 %v4017_v39, %v3991_v3  ;;  %v4225_v3 = vsub.f32 %v4223_v57, %v4224_v60  ;;  %v4220_v39 = vand.u32 4294901760, %v4219_v0  ;;  %v4230_v4 = vand.u32 4294901760, %v4229_v1  ;;  %4270 = vmatpush.msrb.mxu0 %v4229_v1  ;;  %4323 = vmatpush.msrb.mxu2 %v4194_v29 }
 0xa23   : > { %v4050_v7 = vpop.f32.mrf.mxu0 }
 0xa24   : > { %v4051_v9 = vadd.f32 %v4050_v7, %v4018_v5  ;;  %v4226_v7 = vand.u32 4294901760, %v4225_v3  ;;  %4221 = vmatpush.msra.mxu3 %v4220_v39  ;;  %4327 = vmatpush.msrb.mxu2 %v4200_v36 }
 0xa26   : > { %v6143_v14 = vadd.f32 %v4075_v6, %v4051_v9  ;;  %v4231_v9 = vsub.f32 %v4229_v1, %v4230_v4  ;;  %4227 = vmatpush.msra.mxu3 %v4226_v7  ;;  %4331 = vmatpush.msrb.mxu2 %v4206_v42 }
 0xa28   : > { %v6156_v22 = vmul.f32 %v4085_v8, %v6143_v14  ;;  %v4232_v8 = vand.u32 4294901760, %v4231_v9  ;;  %4335 = vmatpush.msrb.mxu2 %v4212_v52  ;;  %v4078_v37 = vmul.f32 0.5, %v6143_v14  ;;  %v4811_v14 = vld [vmem:[%s6370_s30] ss:$0 sm:$0xff]  ;;  %s5249_s30 = scalar_lea.hbm %s5248_s14, 8 }
 0xa29   : > { %p5250_p1 = scmp.ne.s32.totalorder %s5248_s14, %s5249_s30  ;;  %p5255_p7 = scmp.lt.s32.totalorder %s5253_s18, %s5249_s30 }
 0xa2a   : > { %v4087_v27 = vmul.f32 %v6156_v22, %v6156_v22  ;;  %4233 = vmatpush.msra.mxu3 %v4232_v8  ;;  %4339 = vmatpush.msrb.mxu2 %v4218_v59 }
 0xa2b   : > { %p5251_p3 = pnand %p5250_p1, %p5586_p5  ;;  %p5256_p8 = por %p5255_p7, %p5254_p12 }
 0xa2c   : > { %v6187_v15 = vmin.f32 %v4087_v27, 16.0  ;;  %4362 = vmatpush.msrb.mxu3 %v6138_v10  ;;  %4343 = vmatpush.msrb.mxu2 %v4224_v60 }
 0xa2d   : > { %p5252_p4 = pneg %p5251_p3 }
 0xa2e   : > { %v4089_v38 = vmul.f32 2.1237322e-06, %v6187_v15  ;;  %v4100_v44 = vmul.f32 3.8918573e-05, %v6187_v15  ;;  %4364 = vmatpush.msrb.mxu3 %v6148_v18  ;;  %4347 = vmatpush.msrb.mxu2 %v4230_v4 }
 0xa2f   : > { %p5257_p9 = pnand %p5256_p8, %p5252_p4 }
 0xa30   : > { %v4090_v48 = vadd.f32 0.00028619796, %v4089_v38  ;;  %v4101_v49 = vadd.f32 0.001143296, %v4100_v44  ;;  %4366 = vmatpush.msrb.mxu3 %v6164_v24 }
 0xa32   : > { %v4091_v21 = vmul.f32 %v4090_v48, %v6187_v15  ;;  %v4102_v55 = vmul.f32 %v4101_v49, %v6187_v15  ;;  %4368 = vmatpush.msrb.mxu3 %v6176_v31 }
 0xa34   : > { %v4103_v61 = vadd.f32 0.014752088, %v4102_v55  ;;  %v4092_v62 = vadd.f32 0.0036580483, %v4091_v21  ;;  %4370 = vmatpush.msrb.mxu3 %v6196_v40 }
 0xa36   : > { %v4104_v2 = vmul.f32 %v4103_v61, %v6187_v15  ;;  %v4093_v13 = vmul.f32 %v4092_v62, %v6187_v15  ;;  %4372 = vmatpush.msrb.mxu3 %v6213_v46 }
 0xa38   : > { %v4105_v5 = vadd.f32 0.112945676, %v4104_v2  ;;  %v4094_v19 = vadd.f32 0.05243302, %v4093_v13  ;;  %4374 = vmatpush.msrb.mxu3 %v6223_v51 }
 0xa3a   : > { %v4106_v6 = vmul.f32 %v4105_v5, %v6187_v15  ;;  %v4095_v11 = vmul.f32 %v4094_v19, %v6187_v15  ;;  %4376 = vmatpush.msrb.mxu3 %v4167_v20 }
 0xa3c   : > { %v4107_v12 = vadd.f32 0.4994258, %v4106_v6  ;;  %v4096_v25 = vadd.f32 0.18741608, %v4095_v11 }
 0xa3e   : > { %v4108_v17 = vmul.f32 %v4107_v12, %v6187_v15  ;;  %v4097_v27 = vmul.f32 %v4096_v25, %v6187_v15 }
 0xa40   : > { %v4109_v23 = vadd.f32 1.0, %v4108_v17  ;;  %v4098_v24 = vadd.f32 1.1283791, %v4097_v27 }
 0xa42   : > { %4840 = vrcp.f32 %v4109_v23  ;;  %v4121_v29 = vand.u32 2147483648, %v4109_v23  ;;  %v4119_v31 = vand.u32 2147483647, %v4109_v23  ;;  %vm4115_vm4 = vweird.f32 %v4109_v23 }
 0xa43   : > { %v4099_v35 = vmul.f32 %v4098_v24, %v6156_v22 }
 0xa44   : > { %v4122_v34 = vor.u32 1.1754944e-38, %v4121_v29  ;;  %vm4120_vm8 = vcmp.eq.f32.partialorder %v4119_v31, 8.507059e+37 }
 0xa48   : > { %v4841_v10 = vpop.eup %4840 }
 0xa49   : > { %v4111_v18 = vmul.f32 %v4841_v10, %v4109_v23  ;;  %vm4116_vm3 = vweird.f32 %v4841_v10 }
 0xa4a   : > { %vm4117_vm7 = vmor %vm4115_vm4, %vm4116_vm3 }
 0xa4b   : > { %v4112_v28 = vsub.f32 1.0, %v4111_v18 }
 0xa4d   : > { %v4113_v32 = vmul.f32 %v4841_v10, %v4112_v28 }
 0xa4f   : > { %v4114_v33 = vadd.f32 %v4841_v10, %v4113_v32 }
 0xa51   : > { %v4118_v30 = vsel %vm4117_vm7, %v4841_v10, %v4114_v33 }
 0xa52   : > { %v4123_v36 = vsel %vm4120_vm8, %v4122_v34, %v4118_v30 }
 0xa53   : > { %v4124_v15 = vmul.f32 %v4123_v36, %v4099_v35 }
 0xa55   : > { %v4616_v40 = vclamps-f32 %v4124_v15, 1.0 }
 0xa57   : > { %v4127_v38 = vadd.f32 1.0, %v4616_v40 }
 0xa59   : > { %v4128_v44 = vmul.f32 %v4127_v38, %v4078_v37 }
 0xa5b   : > { %v4143_v41 = vsel %vm4141_vm9, %v4128_v44, 0 }
 0xa5c   : > { %v4169_v42 = vand.u32 4294901760, %v4143_v41 }
 0xa5e   : > { %4235 = vmatmul.f32.vlgmr.msra.gmra.mxu3 %v4169_v42  ;;  %v4170_v45 = vsub.f32 %v4143_v41, %v4169_v42 }
 0xa60   : > { %4273 = vmatmul.f32.vlgmr.msrb.gmra.mxu0 %v4170_v45  ;;  %v4171_v16 = vand.u32 4294901760, %v4170_v45 }
 0xa62   : > { %4304 = vmatmul.f32.vlgmr.msrb.gmra.mxu1 %v4171_v16  ;;  %v4172_v46 = vsub.f32 %v4170_v45, %v4171_v16 }
 0xa64   : > { %v4173_v22 = vand.u32 4294901760, %v4172_v46 }
 0xa66   : > { %4174 = vmatmul.f32.vlgmr.msra.gmra.mxu2 %v4173_v22  ;;  %4378 = vmatmul.f32.vlgmr.msrb.gmra.mxu3 %v4169_v42 }
 0xa6e   : > { %4349 = vmatmul.f32.vlgmr.msrb.gmra.mxu2 %v4169_v42 }
 0xadd   : > { %v4274_v51 = vpop.f32.mrf.mxu0 }
 0xadf   : > { %v4305_v52 = vpop.f32.mrf.mxu1 }
 0xae1   : > { %v4236_v47 = vpop.f32.mrf.mxu3 }
 0xae9   : > { %v4175_v48 = vpop.f32.mrf.mxu2  ;;  %v4379_v55 = vpop.f32.mrf.mxu3 }
 0xaea   : > { %v4176_v49 = vadd.f32 %v4811_v14, %v4175_v48 }
 0xaec   : > { %v4237_v50 = vadd.f32 %v4236_v47, %v4176_v49 }
 0xaee   : > { %v4275_v26 = vadd.f32 %v4274_v51, %v4237_v50 }
 0xaf0   : > { %v4306_v53 = vadd.f32 %v4305_v52, %v4275_v26 }
 0xaf1   : > { %v4350_v54 = vpop.f32.mrf.mxu2 }
 0xaf2   : > { %v4351_v21 = vadd.f32 %v4350_v54, %v4306_v53 }
 0xaf4   : > { %v4380_v56 = vadd.f32 %v4379_v55, %v4351_v21 }
 0xaf6   : > { %v4382_v57 = vadd.f32 %v4380_v56, %v6098_v43 }
 0xaf8   : > { %4383 = vst.msk [vmem:[%s851_s0] sm:$0xff] %vm855_vm0, %v4382_v57 }
 0xaf9   : > { %5260 = shalt.err (!%p5257_p9)
}
 0xafa   : > { %4671 = dma.vmem_to_hbm [thread:$0]  (%p5586_p5), %s4398_s6, 128, %s4400_s10, %s4385_s4  }
 0xafb PF: > { %s4411_s23 = sand.u32 1, %s5311_s2   ;;  %p6372_p10 = scmp.ge.s32.totalorder %s5323_s27, 2 }
 0xafc   : > { %s4412_s0 = scalar_lea.sflag [#allocation4], %s4411_s23 }
 0xafd   : > { %p4715_p13 = pnand %p6372_p10, %p5590_p6 }
 0xaff   : > { %p4716_p11 = pneg %p4715_p13 }
 0xb01   : > { %5306 = dma.done.wait (%p4716_p11), %s4412_s0, 128  }
 0xb02   : > { %5308 = vsyncadd (%p4716_p11), %s4412_s0, 4294967168  ;;  %p40_p0 = scmp.ge.s32.totalorder %s5560_s22, 4   ;;  %s6373_s2 = smov %s5315_s25 }
 0xb03   : > { %s6374_s25 = smov %s5319_s26  ;;  %s6375_s26 = smov %s5571_s13 }
 0xb04   : > { %s6376_s27 = smov %s5560_s22  ;;  %42 = sbr.rel (!%p40_p0) target bundleno = 29 (0x1d), region = 197 }
 0xb09   :  { %4418 = vsyncpa [#allocation3], 1 }
 0xb0a   :  { %4420 = vsyncpa [#allocation3 + $0x1], 1 }
 0xb0b   :  { %4421 = vsyncpa [#allocation6], 1 }
 0xb0c   :  { %4422 = vsyncpa [#allocation9], 1 }
 0xb0d   :  { %4423 = vsyncpa [#allocation12], 1 }
 0xb0e   :  { %4424 = vsyncpa [#allocation15], 1 }
 0xb0f   :  { %4425 = vsyncpa [#allocation18], 1 }
 0xb10   :  { %4426 = vsyncpa [#allocation21], 1 }
 0xb11   :  { %4427 = vsyncpa [#allocation4], 1 }
 0xb12   :  { %4429 = vsyncpa [#allocation4 + $0x1], 1 }

</bundles_post_ra>
